<compile_context>
chip_gen: v6e
topology: v6e:2x2x1
jax: 0.10.0
libtpu: 0.0.40
codegen_flags: <defaults>
</compile_context>

<pallas_src>
import functools

import jax
import jax.numpy as jnp
from jax.experimental import pallas as pl
from jax.experimental.pallas import tpu as pltpu

XI = 10.0
EPS = 1.0
IP = 1
NUM_CLASSES = 16
_NEG_PAD_BIAS = -1e9  # padded-class logits -> softmax prob underflows to exactly 0


def _log_softmax(z):
    m = jnp.max(z, axis=1, keepdims=True)
    s = z - m
    return s - jnp.log(jnp.sum(jnp.exp(s), axis=1, keepdims=True))


def vat_kernel(x_ref, d0_ref, w_ref, wt_ref, b_ref, o_ref,
               acc_logits, acc_dw, acc_gram, acc_d0sq,
               *, xi, eps, ip, batch_total, matmul_dtype):
    """Grid = (batch_tiles, D_tiles); D (last axis) is the reduction axis."""
    k = pl.program_id(1)
    nk = pl.num_programs(1)

    # ---- init accumulators at the start of each batch tile's D-reduction ----
    @pl.when(k == 0)
    def _init():
        acc_logits[...] = jnp.zeros_like(acc_logits)
        acc_dw[...] = jnp.zeros_like(acc_dw)
        acc_gram[...] = jnp.zeros_like(acc_gram)
        acc_d0sq[...] = jnp.zeros_like(acc_d0sq)

    # ---- streamed D-tile work: 3 plain MXU matmuls + one row-sum -----------
    x = x_ref[...]        # (TB, TD) f32
    d0 = d0_ref[...]      # (TB, TD) f32
    w = w_ref[...]        # (TD, CP) f32
    wt = wt_ref[...]      # (CP, TD) f32 (pre-transposed host-side; free in XLA)

    xm = x.astype(matmul_dtype)
    dm = d0.astype(matmul_dtype)
    wm = w.astype(matmul_dtype)
    wtm = wt.astype(matmul_dtype)

    acc_logits[...] += jnp.dot(xm, wm, preferred_element_type=jnp.float32)
    acc_dw[...] += jnp.dot(dm, wm, preferred_element_type=jnp.float32)
    acc_gram[...] += jnp.dot(wtm, wm, preferred_element_type=jnp.float32)
    # l2-norm of the raw noise, kept in f32 regardless of matmul dtype.
    acc_d0sq[...] += jnp.sum(d0 * d0, axis=1, keepdims=True)

    # ---- finalize: all VAT math in (B, CP) logit space ----------------------
    @pl.when(k == nk - 1)
    def _finalize():
        logits_x = acc_logits[...] + b_ref[...]          # bias broadcast, once
        logp = _log_softmax(logits_x)                    # hoisted out of ip loop
        p = jnp.exp(logp)
        gram = acc_gram[...]                             # W^T W  (CP, CP)

        # d = l2_normalize(d0)  =>  u := d @ W = d0W / (||d0|| + 1e-8)
        # (normalizations act on tiny (TB,CP) tensors; exact divide keeps
        #  bit-level agreement with the reference epsilon path.)
        u = acc_dw[...] / (jnp.sqrt(acc_d0sq[...]) + 1e-8)

        scale = xi / batch_total
        for _ in range(ip):
            # grad of batchmean KL(p || softmax(logits_x + xi * d@W)) wrt d is
            #   g = (xi/B) (q_hat - p) @ W^T
            # so  g @ W = r @ G  and  ||g||^2 = rowsum(r * (r @ G)),
            # with r = (xi/B)(q_hat - p).
            q_hat = jnp.exp(_log_softmax(logits_x + xi * u))
            r = scale * (q_hat - p)
            rg = jnp.dot(r, gram, preferred_element_type=jnp.float32)
            g_sq = jnp.maximum(jnp.sum(r * rg, axis=1, keepdims=True), 0.0)
            u = rg / (jnp.sqrt(g_sq) + 1e-8)             # = d_new @ W

        # r_adv = eps * d  =>  final logits = logits_x + eps * (d @ W)
        logp_hat = _log_softmax(logits_x + eps * u)
        # partial batchmean KL for this batch tile (summed on host over tiles)
        o_ref[0, 0] = jnp.sum(p * (logp - logp_hat)) / batch_total


def vat_loss_pallas(x_flat, d0, w, b, xi=XI, eps=EPS, ip=IP, *,
                    tile_d=512, matmul_dtype=jnp.float32):
    """VAT loss for a linear classifier, computed in one Pallas kernel.

    x_flat: (B, D) f32, d0: (B, D) f32 noise, w: (D, C), b: (1, C).
    `matmul_dtype=jnp.bfloat16` halves HBM traffic / speeds the MXU on v6e/v7x
    (loosen the correctness tolerance accordingly).
    """
    B, D = x_flat.shape
    C = w.shape[1]
    CP = ((C + 127) // 128) * 128  # lane-dense class padding

    # Pad classifier: zero weight columns + very negative bias => padded
    # classes get probability exactly 0 and contribute zero gradient.
    w_pad = jnp.pad(w.astype(jnp.float32), ((0, 0), (0, CP - C)))
    b_pad = jnp.pad(b.astype(jnp.float32), ((0, 0), (0, CP - C)),
                    constant_values=_NEG_PAD_BIAS)
    w_t = jnp.transpose(w_pad)  # (CP, D): host-side transpose is free in XLA

    tile_d = min(tile_d, D)
    assert D % tile_d == 0 and (tile_d % 128 == 0 or tile_d == D), \
        "tile_d must divide D and be a multiple of 128 (or equal D)"
    tile_b = B  # one batch tile for this small example (block dim == full dim)
    nb, nk = B // tile_b, D // tile_d

    kernel = functools.partial(
        vat_kernel, xi=float(xi), eps=float(eps), ip=int(ip),
        batch_total=float(B), matmul_dtype=matmul_dtype)

    grid_spec = pltpu.PrefetchScalarGridSpec(
        num_scalar_prefetch=0,
        grid=(nb, nk),
        in_specs=[
            pl.BlockSpec((tile_b, tile_d), lambda i, k: (i, k)),   # x
            pl.BlockSpec((tile_b, tile_d), lambda i, k: (i, k)),   # d0
            pl.BlockSpec((tile_d, CP), lambda i, k: (k, 0)),       # W
            pl.BlockSpec((CP, tile_d), lambda i, k: (0, k)),       # W^T
            pl.BlockSpec((1, CP), lambda i, k: (0, 0)),            # bias
        ],
        out_specs=pl.BlockSpec((1, 1), lambda i, k: (i, 0),
                               memory_space=pltpu.MemorySpace.SMEM),
        scratch_shapes=[
            pltpu.VMEM((tile_b, CP), jnp.float32),   # logits_x accumulator
            pltpu.VMEM((tile_b, CP), jnp.float32),   # d0 @ W accumulator
            pltpu.VMEM((CP, CP), jnp.float32),       # Gram (W^T W) accumulator
            pltpu.VMEM((tile_b, 1), jnp.float32),    # ||d0||^2 accumulator
        ],
    )

    # Advisory cost hint for XLA's scheduler around the custom call.
    flops = nb * nk * (2 * 2 * tile_b * tile_d * CP + 2 * CP * tile_d * CP)
    bytes_accessed = (2 * B * D + nb * nk * 2 * tile_d * CP + CP + nb) * 4
    transc = nb * (3 * (ip + 1)) * tile_b * CP

    partials = pl.pallas_call(
        kernel,
        out_shape=jax.ShapeDtypeStruct((nb, 1), jnp.float32),
        grid_spec=grid_spec,
        compiler_params=pltpu.CompilerParams(
            # batch tiles are independent -> shard across v7x's 2 TensorCores;
            # D is a reduction into resident scratch -> "arbitrary".
            dimension_semantics=("parallel", "arbitrary"),
            # Explicit scoped VMEM budget (fits v7x's 64 MiB per-core VMEM).
            vmem_limit_bytes=32 * 1024 * 1024,
        ),
        cost_estimate=pl.CostEstimate(flops=int(flops),
                                      transcendentals=int(transc),
                                      bytes_accessed=int(bytes_accessed)),
    )(x_flat, d0, w_pad, w_t, b_pad)

    return jnp.sum(partials)


def vat_loss_ref(x_flat, d0, w, b, xi=XI, eps=EPS, ip=IP):
    """Pure-JAX reference using autodiff (mirrors the PyTorch semantics)."""
    batch = x_flat.shape[0]

    def logits_of(z):
        return z @ w + b

    logp = jax.nn.log_softmax(logits_of(x_flat), axis=1)
    p = jnp.exp(logp)

    def kl(dd):
        lph = jax.nn.log_softmax(logits_of(x_flat + xi * dd), axis=1)
        return jnp.sum(p * (logp - lph)) / batch

    d = d0 / (jnp.linalg.norm(d0, axis=1, keepdims=True) + 1e-8)
    for _ in range(ip):
        g = jax.grad(kl)(d)
        d = g / (jnp.linalg.norm(g, axis=1, keepdims=True) + 1e-8)

    lph = jax.nn.log_softmax(logits_of(x_flat + eps * d), axis=1)
    return jnp.sum(p * (logp - lph)) / batch


if __name__ == "__main__":
    B, C, H, W = 2, 4, 16, 16
    D = C * H * W

    key = jax.random.PRNGKey(0)
    kx, kd, kw, kb = jax.random.split(key, 4)

    x = jax.random.normal(kx, (B, C, H, W), dtype=jnp.float32)   # NCHW input
    x_flat = x.reshape(B, D)                                     # (B, D) row-major
    d0 = jax.random.normal(kd, (B, D), dtype=jnp.float32)        # randn_like(x), flat

    # deterministic synthetic classifier parameters
    w_cls = jax.random.normal(kw, (D, NUM_CLASSES), dtype=jnp.float32) / jnp.sqrt(D)
    b_cls = 0.01 * jax.random.normal(kb, (1, NUM_CLASSES), dtype=jnp.float32)

    lds = vat_loss_pallas(x_flat, d0, w_cls, b_cls)
    jax.block_until_ready(lds)

    lds_ref = vat_loss_ref(x_flat, d0, w_cls, b_cls)
    # f32 kernel; association differs from the reference (tiled K-reduction,
    # Gram-matrix norm), so allow a small f32 slack. bf16 matmul_dtype would
    # need a looser tolerance.
    assert jnp.allclose(lds, lds_ref, rtol=1e-3, atol=1e-5), (lds, lds_ref)

    print("KERNEL_OK")
</pallas_src>

<mosaic_0001>
module attributes {stable_mosaic.version = 11 : i64} {
  func.func @vat_kernel(%arg0: i32, %arg1: i32, %arg2: memref<2x512xf32, #tpu.memory_space<vmem>>, %arg3: memref<2x512xf32, #tpu.memory_space<vmem>>, %arg4: memref<512x128xf32, #tpu.memory_space<vmem>>, %arg5: memref<128x512xf32, #tpu.memory_space<vmem>>, %arg6: memref<1x128xf32, #tpu.memory_space<vmem>>, %arg7: memref<1x1xf32, #tpu.memory_space<smem>>, %arg8: memref<2x128xf32, #tpu.memory_space<vmem>>, %arg9: memref<2x128xf32, #tpu.memory_space<vmem>>, %arg10: memref<128x128xf32, #tpu.memory_space<vmem>>, %arg11: memref<2x1xf32, #tpu.memory_space<vmem>>) attributes {dimension_semantics = [#tpu.dimension_semantics<parallel>, #tpu.dimension_semantics<arbitrary>], iteration_bounds = array<i64: 1, 2>, scalar_prefetch = 0 : i64, scratch_operands = 4 : i64, tpu.core_type = #tpu.core_type<tc>, window_params = [{transform_indices = @transform_0, window_bounds = array<i64: 2, 512>}, {transform_indices = @transform_1, window_bounds = array<i64: 2, 512>}, {transform_indices = @transform_2, window_bounds = array<i64: 512, 128>}, {transform_indices = @transform_3, window_bounds = array<i64: 128, 512>}, {pipeline_mode = #tpu.pipeline_mode<synchronous>, transform_indices = @transform_4, window_bounds = array<i64: 1, 128>}, {transform_indices = @transform_5, window_bounds = array<i64: 1, 1>}]} {
    %c0_i32 = arith.constant 0 : i32
    %0 = arith.cmpi eq, %arg1, %c0_i32 : i32
    %1 = arith.extui %0 : i1 to i32
    %c0_i32_0 = arith.constant 0 : i32
    %2 = arith.cmpi ne, %1, %c0_i32_0 : i32
    scf.if %2 {
      %cst_28 = arith.constant 0.000000e+00 : f32
      %28 = vector.broadcast %cst_28 : f32 to vector<2x128xf32>
      %c0_29 = arith.constant 0 : index
      %c0_30 = arith.constant 0 : index
      %29 = vector.load %arg8[%c0_29, %c0_30] : memref<2x128xf32, #tpu.memory_space<vmem>>, vector<2x128xf32>
      tpu.vector_store %arg8[%c0_29, %c0_30], %28 {strides = array<i32>} : memref<2x128xf32, #tpu.memory_space<vmem>>, vector<2x128xf32>,
      %cst_31 = arith.constant 0.000000e+00 : f32
      %30 = vector.broadcast %cst_31 : f32 to vector<2x128xf32>
      %c0_32 = arith.constant 0 : index
      %c0_33 = arith.constant 0 : index
      %31 = vector.load %arg9[%c0_32, %c0_33] : memref<2x128xf32, #tpu.memory_space<vmem>>, vector<2x128xf32>
      tpu.vector_store %arg9[%c0_32, %c0_33], %30 {strides = array<i32>} : memref<2x128xf32, #tpu.memory_space<vmem>>, vector<2x128xf32>,
      %cst_34 = arith.constant 0.000000e+00 : f32
      %32 = vector.broadcast %cst_34 : f32 to vector<128x128xf32>
      %c0_35 = arith.constant 0 : index
      %c0_36 = arith.constant 0 : index
      %33 = vector.load %arg10[%c0_35, %c0_36] : memref<128x128xf32, #tpu.memory_space<vmem>>, vector<128x128xf32>
      tpu.vector_store %arg10[%c0_35, %c0_36], %32 {strides = array<i32>} : memref<128x128xf32, #tpu.memory_space<vmem>>, vector<128x128xf32>,
      %cst_37 = arith.constant 0.000000e+00 : f32
      %34 = vector.broadcast %cst_37 : f32 to vector<2x1xf32>
      %c0_38 = arith.constant 0 : index
      %c0_39 = arith.constant 0 : index
      %35 = vector.load %arg11[%c0_38, %c0_39] : memref<2x1xf32, #tpu.memory_space<vmem>>, vector<2x1xf32>
      tpu.vector_store %arg11[%c0_38, %c0_39], %34 {strides = array<i32>} : memref<2x1xf32, #tpu.memory_space<vmem>>, vector<2x1xf32>,
    } else {
    }
    %c0 = arith.constant 0 : index
    %c0_1 = arith.constant 0 : index
    %3 = vector.load %arg2[%c0, %c0_1] : memref<2x512xf32, #tpu.memory_space<vmem>>, vector<2x512xf32>
    %c0_2 = arith.constant 0 : index
    %c0_3 = arith.constant 0 : index
    %4 = vector.load %arg3[%c0_2, %c0_3] : memref<2x512xf32, #tpu.memory_space<vmem>>, vector<2x512xf32>
    %c0_4 = arith.constant 0 : index
    %c0_5 = arith.constant 0 : index
    %5 = vector.load %arg4[%c0_4, %c0_5] : memref<512x128xf32, #tpu.memory_space<vmem>>, vector<512x128xf32>
    %c0_6 = arith.constant 0 : index
    %c0_7 = arith.constant 0 : index
    %6 = vector.load %arg5[%c0_6, %c0_7] : memref<128x512xf32, #tpu.memory_space<vmem>>, vector<128x512xf32>
    %c0_8 = arith.constant 0 : index
    %c0_9 = arith.constant 0 : index
    %7 = vector.load %arg8[%c0_8, %c0_9] : memref<2x128xf32, #tpu.memory_space<vmem>>, vector<2x128xf32>
    %cst = arith.constant dense<0.000000e+00> : vector<2x128xf32>
    %8 = tpu.matmul %3, %5, %cst {dimension_numbers = #tpu.dot_dimension_numbers<[1], [0], [0], [1], [0, 0, 1, 1], [], []>} : vector<2x512xf32>, vector<512x128xf32>, vector<2x128xf32> -> vector<2x128xf32>
    %9 = arith.addf %7, %8 : vector<2x128xf32>
    %c0_10 = arith.constant 0 : index
    %c0_11 = arith.constant 0 : index
    %10 = vector.load %arg8[%c0_10, %c0_11] : memref<2x128xf32, #tpu.memory_space<vmem>>, vector<2x128xf32>
    tpu.vector_store %arg8[%c0_10, %c0_11], %9 {strides = array<i32>} : memref<2x128xf32, #tpu.memory_space<vmem>>, vector<2x128xf32>,
    %c0_12 = arith.constant 0 : index
    %c0_13 = arith.constant 0 : index
    %11 = vector.load %arg9[%c0_12, %c0_13] : memref<2x128xf32, #tpu.memory_space<vmem>>, vector<2x128xf32>
    %cst_14 = arith.constant dense<0.000000e+00> : vector<2x128xf32>
    %12 = tpu.matmul %4, %5, %cst_14 {dimension_numbers = #tpu.dot_dimension_numbers<[1], [0], [0], [1], [0, 0, 1, 1], [], []>} : vector<2x512xf32>, vector<512x128xf32>, vector<2x128xf32> -> vector<2x128xf32>
    %13 = arith.addf %11, %12 : vector<2x128xf32>
    %c0_15 = arith.constant 0 : index
    %c0_16 = arith.constant 0 : index
    %14 = vector.load %arg9[%c0_15, %c0_16] : memref<2x128xf32, #tpu.memory_space<vmem>>, vector<2x128xf32>
    tpu.vector_store %arg9[%c0_15, %c0_16], %13 {strides = array<i32>} : memref<2x128xf32, #tpu.memory_space<vmem>>, vector<2x128xf32>,
    %c0_17 = arith.constant 0 : index
    %c0_18 = arith.constant 0 : index
    %15 = vector.load %arg10[%c0_17, %c0_18] : memref<128x128xf32, #tpu.memory_space<vmem>>, vector<128x128xf32>
    %cst_19 = arith.constant dense<0.000000e+00> : vector<128x128xf32>
    %16 = tpu.matmul %6, %5, %cst_19 {dimension_numbers = #tpu.dot_dimension_numbers<[1], [0], [0], [1], [0, 0, 1, 1], [], []>} : vector<128x512xf32>, vector<512x128xf32>, vector<128x128xf32> -> vector<128x128xf32>
    %17 = arith.addf %15, %16 : vector<128x128xf32>
    %c0_20 = arith.constant 0 : index
    %c0_21 = arith.constant 0 : index
    %18 = vector.load %arg10[%c0_20, %c0_21] : memref<128x128xf32, #tpu.memory_space<vmem>>, vector<128x128xf32>
    tpu.vector_store %arg10[%c0_20, %c0_21], %17 {strides = array<i32>} : memref<128x128xf32, #tpu.memory_space<vmem>>, vector<128x128xf32>,
    %c0_22 = arith.constant 0 : index
    %c0_23 = arith.constant 0 : index
    %19 = vector.load %arg11[%c0_22, %c0_23] : memref<2x1xf32, #tpu.memory_space<vmem>>, vector<2x1xf32>
    %20 = arith.mulf %4, %4 : vector<2x512xf32>
    %cst_24 = arith.constant dense<0.000000e+00> : vector<2xf32>
    %21 = vector.multi_reduction <add>, %20, %cst_24 [1] : vector<2x512xf32> to vector<2xf32>
    %22 = vector.shape_cast %21 : vector<2xf32> to vector<2x1xf32>
    %23 = arith.addf %19, %22 : vector<2x1xf32>
    %c0_25 = arith.constant 0 : index
    %c0_26 = arith.constant 0 : index
    %24 = vector.load %arg11[%c0_25, %c0_26] : memref<2x1xf32, #tpu.memory_space<vmem>>, vector<2x1xf32>
    tpu.vector_store %arg11[%c0_25, %c0_26], %23 {strides = array<i32>} : memref<2x1xf32, #tpu.memory_space<vmem>>, vector<2x1xf32>,
    %c1_i32 = arith.constant 1 : i32
    %25 = arith.cmpi eq, %arg1, %c1_i32 : i32
    %26 = arith.extui %25 : i1 to i32
    %c0_i32_27 = arith.constant 0 : i32
    %27 = arith.cmpi ne, %26, %c0_i32_27 : i32
    scf.if %27 {
      %c0_28 = arith.constant 0 : index
      %c0_29 = arith.constant 0 : index
      %28 = vector.load %arg8[%c0_28, %c0_29] : memref<2x128xf32, #tpu.memory_space<vmem>>, vector<2x128xf32>
      %c0_30 = arith.constant 0 : index
      %c0_31 = arith.constant 0 : index
      %29 = vector.load %arg6[%c0_30, %c0_31] : memref<1x128xf32, #tpu.memory_space<vmem>>, vector<1x128xf32>
      %30 = vector.broadcast %29 : vector<1x128xf32> to vector<2x128xf32>
      %31 = arith.addf %28, %30 : vector<2x128xf32>
      %cst_32 = arith.constant dense<0xFF800000> : vector<2xf32>
      %32 = vector.multi_reduction <maximumf>, %31, %cst_32 [1] : vector<2x128xf32> to vector<2xf32>
      %33 = vector.shape_cast %32 : vector<2xf32> to vector<2x1xf32>
      %34 = vector.broadcast %33 : vector<2x1xf32> to vector<2x128xf32>
      %35 = arith.subf %31, %34 : vector<2x128xf32>
      %36 = math.exp %35 : vector<2x128xf32>
      %cst_33 = arith.constant dense<0.000000e+00> : vector<2xf32>
      %37 = vector.multi_reduction <add>, %36, %cst_33 [1] : vector<2x128xf32> to vector<2xf32>
      %38 = vector.shape_cast %37 : vector<2xf32> to vector<2x1xf32>
      %39 = math.log %38 : vector<2x1xf32>
      %40 = vector.broadcast %39 : vector<2x1xf32> to vector<2x128xf32>
      %41 = arith.subf %35, %40 : vector<2x128xf32>
      %42 = math.exp %41 : vector<2x128xf32>
      %c0_34 = arith.constant 0 : index
      %c0_35 = arith.constant 0 : index
      %43 = vector.load %arg10[%c0_34, %c0_35] : memref<128x128xf32, #tpu.memory_space<vmem>>, vector<128x128xf32>
      %c0_36 = arith.constant 0 : index
      %c0_37 = arith.constant 0 : index
      %44 = vector.load %arg9[%c0_36, %c0_37] : memref<2x128xf32, #tpu.memory_space<vmem>>, vector<2x128xf32>
      %c0_38 = arith.constant 0 : index
      %c0_39 = arith.constant 0 : index
      %45 = vector.load %arg11[%c0_38, %c0_39] : memref<2x1xf32, #tpu.memory_space<vmem>>, vector<2x1xf32>
      %46 = math.sqrt %45 : vector<2x1xf32>
      %cst_40 = arith.constant 9.99999993E-9 : f32
      %47 = vector.broadcast %cst_40 : f32 to vector<2x1xf32>
      %48 = arith.addf %46, %47 : vector<2x1xf32>
      %49 = vector.broadcast %48 : vector<2x1xf32> to vector<2x128xf32>
      %50 = arith.divf %44, %49 : vector<2x128xf32>
      %cst_41 = arith.constant 1.000000e+01 : f32
      %51 = vector.broadcast %cst_41 : f32 to vector<2x128xf32>
      %52 = arith.mulf %51, %50 : vector<2x128xf32>
      %53 = arith.addf %31, %52 : vector<2x128xf32>
      %cst_42 = arith.constant dense<0xFF800000> : vector<2xf32>
      %54 = vector.multi_reduction <maximumf>, %53, %cst_42 [1] : vector<2x128xf32> to vector<2xf32>
      %55 = vector.shape_cast %54 : vector<2xf32> to vector<2x1xf32>
      %56 = vector.broadcast %55 : vector<2x1xf32> to vector<2x128xf32>
      %57 = arith.subf %53, %56 : vector<2x128xf32>
      %58 = math.exp %57 : vector<2x128xf32>
      %cst_43 = arith.constant dense<0.000000e+00> : vector<2xf32>
      %59 = vector.multi_reduction <add>, %58, %cst_43 [1] : vector<2x128xf32> to vector<2xf32>
      %60 = vector.shape_cast %59 : vector<2xf32> to vector<2x1xf32>
      %61 = math.log %60 : vector<2x1xf32>
      %62 = vector.broadcast %61 : vector<2x1xf32> to vector<2x128xf32>
      %63 = arith.subf %57, %62 : vector<2x128xf32>
      %64 = math.exp %63 : vector<2x128xf32>
      %65 = arith.subf %64, %42 : vector<2x128xf32>
      %cst_44 = arith.constant 5.000000e+00 : f32
      %66 = vector.broadcast %cst_44 : f32 to vector<2x128xf32>
      %67 = arith.mulf %66, %65 : vector<2x128xf32>
      %cst_45 = arith.constant dense<0.000000e+00> : vector<2x128xf32>
      %68 = tpu.matmul %67, %43, %cst_45 {dimension_numbers = #tpu.dot_dimension_numbers<[1], [0], [0], [1], [0, 0, 1, 1], [], []>} : vector<2x128xf32>, vector<128x128xf32>, vector<2x128xf32> -> vector<2x128xf32>
      %69 = arith.mulf %67, %68 : vector<2x128xf32>
      %cst_46 = arith.constant dense<0.000000e+00> : vector<2xf32>
      %70 = vector.multi_reduction <add>, %69, %cst_46 [1] : vector<2x128xf32> to vector<2xf32>
      %71 = vector.shape_cast %70 : vector<2xf32> to vector<2x1xf32>
      %cst_47 = arith.constant 0.000000e+00 : f32
      %72 = vector.broadcast %cst_47 : f32 to vector<2x1xf32>
      %73 = arith.maximumf %71, %72 : vector<2x1xf32>
      %74 = math.sqrt %73 : vector<2x1xf32>
      %cst_48 = arith.constant 9.99999993E-9 : f32
      %75 = vector.broadcast %cst_48 : f32 to vector<2x1xf32>
      %76 = arith.addf %74, %75 : vector<2x1xf32>
      %77 = vector.broadcast %76 : vector<2x1xf32> to vector<2x128xf32>
      %78 = arith.divf %68, %77 : vector<2x128xf32>
      %cst_49 = arith.constant 1.000000e+00 : f32
      %79 = vector.broadcast %cst_49 : f32 to vector<2x128xf32>
      %80 = arith.mulf %79, %78 : vector<2x128xf32>
      %81 = arith.addf %31, %80 : vector<2x128xf32>
      %cst_50 = arith.constant dense<0xFF800000> : vector<2xf32>
      %82 = vector.multi_reduction <maximumf>, %81, %cst_50 [1] : vector<2x128xf32> to vector<2xf32>
      %83 = vector.shape_cast %82 : vector<2xf32> to vector<2x1xf32>
      %84 = vector.broadcast %83 : vector<2x1xf32> to vector<2x128xf32>
      %85 = arith.subf %81, %84 : vector<2x128xf32>
      %86 = math.exp %85 : vector<2x128xf32>
      %cst_51 = arith.constant dense<0.000000e+00> : vector<2xf32>
      %87 = vector.multi_reduction <add>, %86, %cst_51 [1] : vector<2x128xf32> to vector<2xf32>
      %88 = vector.shape_cast %87 : vector<2xf32> to vector<2x1xf32>
      %89 = math.log %88 : vector<2x1xf32>
      %90 = vector.broadcast %89 : vector<2x1xf32> to vector<2x128xf32>
      %91 = arith.subf %85, %90 : vector<2x128xf32>
      %92 = arith.subf %41, %91 : vector<2x128xf32>
      %93 = arith.mulf %42, %92 : vector<2x128xf32>
      %94 = vector.shape_cast %93 : vector<2x128xf32> to vector<1x2x128xf32>
      %cst_52 = arith.constant dense<0.000000e+00> : vector<1xf32>
      %95 = vector.multi_reduction <add>, %94, %cst_52 [1, 2] : vector<1x2x128xf32> to vector<1xf32>
      %96 = vector.shape_cast %95 : vector<1xf32> to vector<1x1x1xf32>
      %97 = vector.extract %96[0, 0, 0] : f32 from vector<1x1x1xf32>
      %cst_53 = arith.constant 2.000000e+00 : f32
      %98 = arith.divf %97, %cst_53 : f32
      %c0_54 = arith.constant 0 : index
      %c0_55 = arith.constant 0 : index
      %99 = memref.load %arg7[%c0_54, %c0_55] : memref<1x1xf32, #tpu.memory_space<smem>>
      memref.store %98, %arg7[%c0_54, %c0_55] : memref<1x1xf32, #tpu.memory_space<smem>>
    } else {
    }
    return
  }
  func.func @transform_0(%arg0: i32, %arg1: i32) -> (i32, i32) {
    %c0_i32 = arith.constant 0 : i32
    return %arg0, %arg1 : i32, i32
  }
  func.func @transform_1(%arg0: i32, %arg1: i32) -> (i32, i32) {
    %c0_i32 = arith.constant 0 : i32
    return %arg0, %arg1 : i32, i32
  }
  func.func @transform_2(%arg0: i32, %arg1: i32) -> (i32, i32) {
    %c0_i32 = arith.constant 0 : i32
    %c0_i32_0 = arith.constant 0 : i32
    return %arg1, %c0_i32 : i32, i32
  }
  func.func @transform_3(%arg0: i32, %arg1: i32) -> (i32, i32) {
    %c0_i32 = arith.constant 0 : i32
    %c0_i32_0 = arith.constant 0 : i32
    return %c0_i32, %arg1 : i32, i32
  }
  func.func @transform_4(%arg0: i32, %arg1: i32) -> (i32, i32) {
    %c0_i32 = arith.constant 0 : i32
    %c0_i32_0 = arith.constant 0 : i32
    %c0_i32_1 = arith.constant 0 : i32
    return %c0_i32, %c0_i32_0 : i32, i32
  }
  func.func @transform_5(%arg0: i32, %arg1: i32) -> (i32, i32) {
    %c0_i32 = arith.constant 0 : i32
    %c0_i32_0 = arith.constant 0 : i32
    return %arg0, %c0_i32 : i32, i32
  }
}

</mosaic_0001>

<bundles_post_ra>
// kernel: tpu_custom_call.1
= control target key start
LH: loop header
LB: loop body
LE: loop exit
PB: predicated region body
PF: predicated region fallthrough
CT: control target
= control target key end

     0   :  { %s2945_s0 = inlined_call_operand.hbm [shape: f32[2,1024], index: 0, kind: input, shape index: {}]   ;;  %s2946_s1 = inlined_call_operand.hbm [shape: f32[2,1024], index: 1, kind: input, shape index: {}]   ;;  %s2947_s2 = inlined_call_operand.hbm [shape: f32[1024,128], index: 2, kind: input, shape index: {}]   ;;  %s2948_s3 = inlined_call_operand.hbm [shape: f32[128,1024], index: 3, kind: input, shape index: {}]   ;;  %s2949_s4 = inlined_call_operand.vmem [shape: f32[1,128], index: 4, kind: input, shape index: {}]   ;;  %s2950_s5 = inlined_call_operand.hbm [shape: f32[1,1], index: 5, kind: output, shape index: {}]  }
   0x1   :  { %2967 = sst [smem:[#allocation30_spill]] %s2945_s0 }
   0x2   :  { %2968 = sst [smem:[#allocation31_spill]] %s2946_s1 }
   0x3   :  { %2969 = sst [smem:[#allocation32_spill]] %s2947_s2 }
   0x4   :  { %10 = vsyncpa [#allocation7], 0 }
   0x5   :  { %12 = vsyncpa [#allocation7 + $0x1], 0 }
   0x6   :  { %13 = vsyncpa [#allocation10], 0 }
   0x7   :  { %15 = vsyncpa [#allocation10 + $0x1], 0 }
   0x8   :  { %16 = vsyncpa [#allocation13], 0 }
   0x9   :  { %18 = vsyncpa [#allocation13 + $0x1], 0 }
   0xa   :  { %19 = vsyncpa [#allocation8], 0  ;;  %s2296_s18 = smov 0   ;;  %s2298_s19 = smov 0  }
   0xb   :  { %s2300_s20 = smov 0   ;;  %s2302_s21 = smov 0  }
   0xc   :  { %s2304_s22 = smov 0   ;;  %s2306_s23 = smov 0  }
   0xd LB: > { %s2325_s24 = sadd.s32 4294967295, %s2249_s23   ;;  %s34_s25 = sadd.s32 1, %s2245_s22  ;;  %s2249_s23 = sphi %s2306_s23, %s25_s23   ;;  %s2245_s22 = sphi %s2304_s22, %s3004_s22   ;;  %s2241_s21 = sphi %s2302_s21, %s3003_s21   ;;  %s2237_s20 = sphi %s2300_s20, %s3002_s20   ;;  %s2233_s19 = sphi %s2298_s19, %s3001_s19   ;;  %s2229_s18 = sphi %s2296_s18, %s3000_s18  }
   0xe   : > { %p35_p0 = scmp.ge.s32.totalorder %s34_s25, 2  ;;  %s46_s26 = sadd.s32 1, %s2237_s20 }
   0xf   : > { %p53_p1 = scmp.ne.s32.totalorder %s2237_s20, %s2233_s19  ;;  %p54_p2 = scmp.eq.s32.totalorder %s2249_s23, 0 }
  0x10   : > { %s3006_s25 = smov (%p35_p0, %s34_s25), 0  ;;  %p59_p4 = scmp.ne.s32.totalorder %s2233_s19, %s2229_s18 }
  0x11   : > { %p55_p3 = por %p54_p2, %p53_p1  ;;  %s42_s27 = ssub.s32 %s2245_s22, %s3006_s25 }
  0x12   : > { %p60_p5 = scmp.eq.s32.totalorder %s2325_s24, 0  ;;  %p44_p6 = scmp.eq.s32.totalorder %s42_s27, 0 }
  0x13   : > { %p1976_p8 = scmp.lt.s32.totalorder %s2249_s23, 2  ;;  %s2347_s30 = sand.u32 1, %s2237_s20  }
  0x14   : > { %p2338_p7 = por %p60_p5, %p59_p4  ;;  %s1593_s6 = sshll.u32 %s2245_s22, 7 }
  0x15   : > { %s2344_s29 = scalar_select %p44_p6, %s2237_s20, %s46_s26  }
  0x16   : > { %s1569_s7 = sshll.u32 %s2347_s30, 3  ;;  %p2351_p9 = pnand %p1976_p8, %p55_p3 }
  0x17   : > { %s234_s9 = sand.u32 1, %s2249_s23   ;;  %s2972_s1 = sld [smem:[#allocation31_spill]] }
  0x18   : > { %s238_s13 = scalar_lea.vmem [#allocation9], %s1569_s7  ;;  %s2360_s16 = scalar_lea.sflag [#allocation10], %s234_s9 }
  0x19   : > { %s248_s14 = sshll.u32 %s238_s13, 4  ;;  %p2067_p10 = pneg %p2351_p9  ;;  %s249_s14 = int_to_ptr.vmem [resolvable:$true] %s248_s14 }
  0x1a   : > { %s2078_s17 = scalar_lea.vmem %s249_s14, 128  ;;  %s2251_s18 = smov [#allocation9]  }
  0x1b   : > { %p2079_p11 = scmp.ne.s32.totalorder %s249_s14, %s2078_s17  ;;  %s2083_s26 = sshll.u32 %s2251_s18, 4  ;;  %s2084_s26 = int_to_ptr.vmem [resolvable:$false] %s2083_s26 }
  0x1c   : > { %s2085_s27 = scalar_lea.vmem %s2084_s26, 256  ;;  %p2086_p0 = scmp.lt.s32.totalorder %s249_s14, %s2084_s26 }
  0x1d   : > { %s246_s12 = scalar_lea.hbm %s2972_s1, %s1593_s6  ;;  %p2081_p12 = pnand %p2079_p11, %p2067_p10 }
  0x1e   : > { %p2087_p1 = scmp.lt.s32.totalorder %s2085_s27, %s2078_s17 }
  0x1f   : > { %p2082_p13 = pneg %p2081_p12 }
  0x20   : > { %p2088_p2 = por %p2087_p1, %p2086_p0 }
  0x22   : > { %p2089_p3 = pnand %p2088_p2, %p2082_p13 }
  0x24   : > { %2092 = shalt.err (!%p2089_p3)
}
  0x25   : > { %1969 = dma.hbm_to_vmem [thread:$0]  (!%p2351_p9), %s246_s12, 128, %s249_s14, %s2360_s16  }
  0x26   : > { %p1581_p4 = scmp.ge.s32.totalorder %s2249_s23, 1  ;;  %p295_p5 = scmp.lt.s32.totalorder %s2249_s23, 3 }
  0x27   : > { %s2974_s0 = sld [smem:[#allocation30_spill]]  ;;  %s217_s17 = scalar_lea.vmem [#allocation6], %s1569_s7 }
  0x28   : > { %p2372_p6 = pnand %p1581_p4, %p295_p5  ;;  %s227_s18 = sshll.u32 %s217_s17, 4  ;;  %s228_s18 = int_to_ptr.vmem [resolvable:$true] %s227_s18 }
  0x29   : > { %s1595_s26 = sshll.u32 %s2245_s22, 13  ;;  %s214_s27 = scalar_lea.sflag [#allocation7], %s2347_s30 }
  0x2a   : > { %s2106_s15 = scalar_lea.vmem %s228_s18, 128  ;;  %s2252_s12 = smov [#allocation6]  }
  0x2b   : > { %p2107_p8 = scmp.ne.s32.totalorder %s228_s18, %s2106_s15  ;;  %s2111_s14 = sshll.u32 %s2252_s12, 4  ;;  %s2112_s14 = int_to_ptr.vmem [resolvable:$false] %s2111_s14 }
  0x2c   : > { %s2113_s1 = scalar_lea.vmem %s2112_s14, 256  ;;  %p2114_p13 = scmp.lt.s32.totalorder %s228_s18, %s2112_s14 }
  0x2d   : > { %s225_s13 = scalar_lea.hbm %s2974_s0, %s1593_s6  ;;  %p2109_p11 = pnand %p2107_p8, %p2067_p10 }
  0x2e   : > { %p2115_p0 = scmp.lt.s32.totalorder %s2113_s1, %s2106_s15 }
  0x2f   : > { %p2110_p12 = pneg %p2109_p11 }
  0x30   : > { %p2116_p1 = por %p2115_p0, %p2114_p13 }
  0x32   : > { %p2117_p2 = pnand %p2116_p1, %p2110_p12 }
  0x34   : > { %2120 = shalt.err (!%p2117_p2)
}
  0x35   : > { %1966 = dma.hbm_to_vmem [thread:$0]  (!%p2351_p9), %s225_s13, 128, %s228_s18, %s214_s27  }
  0x36   : > { %s2975_s2 = sld [smem:[#allocation32_spill]]  ;;  %s2976_s11 = sshll.u32 %s2347_s30, 9 }
  0x37   : > { %s259_s17 = scalar_lea.vmem [#allocation11], %s2976_s11  ;;  %s2253_s1 = smov [#allocation11]  }
  0x38   : > { %s266_s0 = sshll.u32 %s259_s17, 4  ;;  %s2139_s15 = sshll.u32 %s2253_s1, 4  ;;  %s267_s0 = int_to_ptr.vmem [resolvable:$true] %s266_s0  ;;  %s2140_s15 = int_to_ptr.vmem [resolvable:$false] %s2139_s15 }
  0x39   : > { %s2134_s12 = scalar_lea.vmem %s267_s0, 8192  ;;  %s2141_s14 = scalar_lea.vmem %s2140_s15, 16384 }
  0x3a   : > { %p2135_p3 = scmp.ne.s32.totalorder %s267_s0, %s2134_s12  ;;  %p2142_p8 = scmp.lt.s32.totalorder %s267_s0, %s2140_s15 }
  0x3b   : > { %p2143_p11 = scmp.lt.s32.totalorder %s2141_s14, %s2134_s12 }
  0x3c   : > { %s265_s10 = scalar_lea.hbm %s2975_s2, %s1595_s26  ;;  %p2137_p4 = pnand %p2135_p3, %p2067_p10 }
  0x3d   : > { %p2144_p12 = por %p2143_p11, %p2142_p8 }
  0x3e   : > { %p2138_p5 = pneg %p2137_p4 }
  0x40   : > { %p2145_p13 = pnand %p2144_p12, %p2138_p5 }
  0x42   : > { %2148 = shalt.err (!%p2145_p13)
}
  0x43   : > { %s2254_s13 = smov 128   ;;  %s2255_s18 = smov 8  }
  0x44   : > { %1972 = dma.hbm_to_vmem [thread:$0]  (!%p2351_p9), %s265_s10, 8192, %s267_s0, %s2360_s16, %s2254_s13, %s2254_s13, %s2255_s18  }
  0x45   : > { %s1596_s26 = sshll.u32 %s2245_s22, 9  ;;  %s280_s17 = scalar_lea.vmem [#allocation12], %s2976_s11 }
  0x46   : > { %s286_s7 = scalar_lea.hbm %s2948_s3, %s1596_s26  ;;  %s287_s12 = sshll.u32 %s280_s17, 4  ;;  %s288_s12 = int_to_ptr.vmem [resolvable:$true] %s287_s12 }
  0x47   : > { %s277_s1 = scalar_lea.sflag [#allocation13], %s2347_s30  ;;  %s2162_s15 = scalar_lea.vmem %s288_s12, 8192 }
  0x48   : > { %p2163_p0 = scmp.ne.s32.totalorder %s288_s12, %s2162_s15  ;;  %s2256_s14 = smov [#allocation12]  }
  0x49   : > { %s2167_s2 = sshll.u32 %s2256_s14, 4  ;;  %s2168_s2 = int_to_ptr.vmem [resolvable:$false] %s2167_s2 }
  0x4a   : > { %p2165_p1 = pnand %p2163_p0, %p2067_p10  ;;  %s2169_s0 = scalar_lea.vmem %s2168_s2, 16384 }
  0x4b   : > { %p2170_p3 = scmp.lt.s32.totalorder %s288_s12, %s2168_s2  ;;  %p2171_p4 = scmp.lt.s32.totalorder %s2169_s0, %s2162_s15 }
  0x4c   : > { %p2166_p2 = pneg %p2165_p1 }
  0x4d   : > { %p2172_p5 = por %p2171_p4, %p2170_p3 }
  0x4f   : > { %p2173_p8 = pnand %p2172_p5, %p2166_p2 }
  0x51   : > { %2176 = shalt.err (!%p2173_p8)
}
  0x52   : > { %s2257_s16 = smov 1024   ;;  %s2258_s10 = smov 512  }
  0x53   : > { %s2259_s13 = smov 32   ;;  %299 = sbr.rel (%p2372_p6) target bundleno = 1883 (0x75b), region = 40 }
  0x54   : > { %1975 = dma.hbm_to_vmem [thread:$0]  (!%p2351_p9), %s286_s7, 8192, %s288_s12, %s277_s1, %s2257_s16, %s2258_s10, %s2259_s13  }
  0x58   : > { %s301_s30 = sand.u32 1, %s2233_s19  }
  0x59   : > { %s1582_s18 = sshll.u32 %s301_s30, 3  ;;  %s302_s26 = scalar_lea.sflag [#allocation7], %s301_s30 }
  0x5a   : > { %s2412_s27 = scalar_lea.vmem [#allocation6], %s1582_s18 }
  0x5b   : > { %2212 = dma.done.wait (%p2338_p7), %s302_s26, 128  }
  0x5c   : > { %2214 = vsyncadd (%p2338_p7), %s302_s26, 4294967168  ;;  %s310_s2 = sand.u32 1, %s2325_s24   ;;  %s2419_s6 = scalar_lea.vmem [#allocation9], %s1582_s18 }
  0x5d   : > { %s311_s8 = scalar_lea.sflag [#allocation10], %s310_s2 }
  0x5e   : > { %2216 = dma.done.wait (%p2338_p7), %s311_s8, 8320  }
  0x5f   : > { %2218 = vsyncadd (%p2338_p7), %s311_s8, 4294958976  ;;  %s1584_s9 = sshll.u32 %s301_s30, 9  ;;  %s329_s11 = scalar_lea.sflag [#allocation13], %s301_s30 }
  0x60   : > { %s2425_s7 = scalar_lea.vmem [#allocation11], %s1584_s9  ;;  %s2427_s17 = scalar_lea.vmem [#allocation12], %s1584_s9 }
  0x61   : > { %2220 = dma.done.wait (%p2338_p7), %s329_s11, 8192  }
  0x62   : > { %2222 = vsyncadd (%p2338_p7), %s329_s11, 4294959104  ;;  %p1586_p9 = scmp.ne.s32.totalorder %s2241_s21, 0 }
  0x64   : > { %376 = sbr.rel (%p1586_p9) target bundleno = 116 (0x74), region = 60 }
  0x69   : > { %vm395_vm0 = vcmask 1024   ;;  %v2260_v0 = vmov 0.0  }
  0x6a   : > { %377 = vst [vmem:[#allocation2] sm:$0x3] %v2260_v0  ;;  %378 = vst [vmem:[#allocation3] sm:$0x3] %v2260_v0 }
  0x6b   : > { %379 = vst [vmem:[#allocation4 + $0x30] sm:$0xff] %v2260_v0  ;;  %380 = vst [vmem:[#allocation4] sm:$0xff] %v2260_v0 }
  0x6c   : > { %381 = vst [vmem:[#allocation4 + $0x58] sm:$0xff] %v2260_v0  ;;  %382 = vst [vmem:[#allocation4 + $0x18] sm:$0xff] %v2260_v0 }
  0x6d   : > { %383 = vst [vmem:[#allocation4 + $0x50] sm:$0xff] %v2260_v0  ;;  %384 = vst [vmem:[#allocation4 + $0x68] sm:$0xff] %v2260_v0 }
  0x6e   : > { %385 = vst [vmem:[#allocation4 + $0x8] sm:$0xff] %v2260_v0  ;;  %386 = vst [vmem:[#allocation4 + $0x48] sm:$0xff] %v2260_v0 }
  0x6f   : > { %387 = vst [vmem:[#allocation4 + $0x40] sm:$0xff] %v2260_v0  ;;  %388 = vst [vmem:[#allocation4 + $0x20] sm:$0xff] %v2260_v0 }
  0x70   : > { %389 = vst [vmem:[#allocation4 + $0x10] sm:$0xff] %v2260_v0  ;;  %390 = vst [vmem:[#allocation4 + $0x38] sm:$0xff] %v2260_v0 }
  0x71   : > { %391 = vst [vmem:[#allocation4 + $0x60] sm:$0xff] %v2260_v0  ;;  %392 = vst [vmem:[#allocation4 + $0x70] sm:$0xff] %v2260_v0 }
  0x72   : > { %393 = vst [vmem:[#allocation4 + $0x78] sm:$0xff] %v2260_v0  ;;  %394 = vst [vmem:[#allocation4 + $0x28] sm:$0xff] %v2260_v0 }
  0x73   : > { %396 = vst.msk [vmem:[#allocation5] sm:$0x3] %vm395_vm0, %v2260_v0 }
  0x74 PF: > { %v2436_v1 = vld [vmem:[%s2425_s7 + $0xf8] sm:$0xff]  ;;  %v2450_v5 = vld [vmem:[%s2425_s7 + $0xf0] sm:$0xff]  ;;  %v2464_v9 = vld [vmem:[%s2425_s7 + $0xe8] sm:$0xff]  ;;  %v2261_v31 = vmov 1983009808   ;;  %v533_v33 = vlaneseq  ;;  %vm1219_vm1 = vcmask 1041408  }
  0x75   : > { %v2439_v2 = vld [vmem:[%s2425_s7 + $0x1f8] sm:$0xff]  ;;  %1597 = vmatprep.subr.mxu0 %v2436_v1  ;;  %v2453_v6 = vld [vmem:[%s2425_s7 + $0x1f0] sm:$0xff]  ;;  %v2469_v10 = vld [vmem:[%s2425_s7 + $0x1e8] sm:$0xff]  ;;  %v531_v32 = vunpack.c.l.s4 %v2261_v31  ;;  %vm1230_vm2 = vcmask 1024   ;;  %p1587_p7 = scmp.ne.s32.totalorder %s2241_s21, 1 }
  0x76   : > { %v2442_v3 = vld [vmem:[%s2425_s7 + $0x78] sm:$0xff]  ;;  %1632 = vmatprep.subr.mxu1 %v2439_v2  ;;  %v2458_v7 = vld [vmem:[%s2425_s7 + $0x70] sm:$0xff]  ;;  %v2472_v11 = vld [vmem:[%s2425_s7 + $0x68] sm:$0xff]  ;;  %v534_v43 = vshrl.u32 %v533_v33, 7 }
  0x77   : > { %v2447_v4 = vld [vmem:[%s2425_s7 + $0x178] sm:$0xff]  ;;  %1598 = vmatpush3.msra.mxu0 %v2442_v3  ;;  %v2461_v8 = vld [vmem:[%s2425_s7 + $0x170] sm:$0xff]  ;;  %v2475_v12 = vld [vmem:[%s2425_s7 + $0x168] sm:$0xff]  ;;  %v532_v42 = vunpack.c.0.s8 %v531_v32 }
  0x78   : > { %1633 = vmatpush3.msra.mxu1 %v2447_v4  ;;  %1599 = vmatprep.subr.mxu0 %v2450_v5  ;;  %v2480_v13 = vld [vmem:[%s2425_s7 + $0xe0] sm:$0xff]  ;;  %v2496_v17 = vld [vmem:[%s2425_s7 + $0xd8] sm:$0xff]  ;;  %v2512_v21 = vld [vmem:[%s2425_s7 + $0xd0] sm:$0xff] }
  0x79   : > { %1634 = vmatprep.subr.mxu1 %v2453_v6  ;;  %1600 = vmatpush3.msra.mxu0 %v2458_v7  ;;  %v2483_v14 = vld [vmem:[%s2425_s7 + $0x1e0] sm:$0xff]  ;;  %v2499_v18 = vld [vmem:[%s2425_s7 + $0x1d8] sm:$0xff]  ;;  %v2515_v22 = vld [vmem:[%s2425_s7 + $0x1d0] sm:$0xff]  ;;  %v2613_v52 = vsub.s32 %v532_v42, %v534_v43 }
  0x7a   : > { %1635 = vmatpush3.msra.mxu1 %v2461_v8  ;;  %1601 = vmatprep.subr.mxu0 %v2464_v9  ;;  %v2488_v15 = vld [vmem:[%s2425_s7 + $0x60] sm:$0xff]  ;;  %v2504_v19 = vld [vmem:[%s2425_s7 + $0x58] sm:$0xff]  ;;  %v2520_v23 = vld [vmem:[%s2425_s7 + $0x50] sm:$0xff] }
  0x7b   : > { %1636 = vmatprep.subr.mxu1 %v2469_v10  ;;  %v2491_v16 = vld [vmem:[%s2425_s7 + $0x160] sm:$0xff]  ;;  %1602 = vmatpush3.msra.mxu0 %v2472_v11  ;;  %v2507_v20 = vld [vmem:[%s2425_s7 + $0x158] sm:$0xff]  ;;  %v2523_v24 = vld [vmem:[%s2425_s7 + $0x150] sm:$0xff] }
  0x7c   : > { %1637 = vmatpush3.msra.mxu1 %v2475_v12  ;;  %1603 = vmatprep.subr.mxu0 %v2480_v13  ;;  %v2528_v25 = vld [vmem:[%s2425_s7 + $0xc8] sm:$0xff]  ;;  %v2544_v29 = vld [vmem:[%s2425_s7 + $0xc0] sm:$0xff]  ;;  %v2560_v36 = vld [vmem:[%s2425_s7 + $0xb8] sm:$0xff] }
  0x7d   : > { %1638 = vmatprep.subr.mxu1 %v2483_v14  ;;  %1604 = vmatpush3.msra.mxu0 %v2488_v15  ;;  %v2531_v26 = vld [vmem:[%s2425_s7 + $0x1c8] sm:$0xff]  ;;  %v2547_v30 = vld [vmem:[%s2425_s7 + $0x1c0] sm:$0xff]  ;;  %v2563_v37 = vld [vmem:[%s2425_s7 + $0x1b8] sm:$0xff] }
  0x7e   : > { %1639 = vmatpush3.msra.mxu1 %v2491_v16  ;;  %1605 = vmatprep.subr.mxu0 %v2496_v17  ;;  %v2536_v27 = vld [vmem:[%s2425_s7 + $0x48] sm:$0xff]  ;;  %v2552_v34 = vld [vmem:[%s2425_s7 + $0x40] sm:$0xff]  ;;  %v2568_v38 = vld [vmem:[%s2425_s7 + $0x38] sm:$0xff] }
  0x7f   : > { %1640 = vmatprep.subr.mxu1 %v2499_v18  ;;  %1606 = vmatpush3.msra.mxu0 %v2504_v19  ;;  %v2539_v28 = vld [vmem:[%s2425_s7 + $0x148] sm:$0xff]  ;;  %v2555_v35 = vld [vmem:[%s2425_s7 + $0x140] sm:$0xff]  ;;  %v2571_v39 = vld [vmem:[%s2425_s7 + $0x138] sm:$0xff] }
  0x80   : > { %1641 = vmatpush3.msra.mxu1 %v2507_v20  ;;  %1607 = vmatprep.subr.mxu0 %v2512_v21  ;;  %v2576_v40 = vld [vmem:[%s2425_s7 + $0xb0] sm:$0xff]  ;;  %v2592_v46 = vld [vmem:[%s2425_s7 + $0xa8] sm:$0xff]  ;;  %v2608_v50 = vld [vmem:[%s2425_s7 + $0xa0] sm:$0xff] }
  0x81   : > { %1642 = vmatprep.subr.mxu1 %v2515_v22  ;;  %1608 = vmatpush3.msra.mxu0 %v2520_v23  ;;  %v2579_v41 = vld [vmem:[%s2425_s7 + $0x1b0] sm:$0xff]  ;;  %2977 = vst [vmem:[#allocation19_spill] sm:$0xff] %v2592_v46  ;;  %v2595_v47 = vld [vmem:[%s2425_s7 + $0x1a8] sm:$0xff]  ;;  %2981 = vst [vmem:[#allocation23_spill] sm:$0xff] %v2608_v50 }
  0x82   : > { %1643 = vmatpush3.msra.mxu1 %v2523_v24  ;;  %1609 = vmatprep.subr.mxu0 %v2528_v25  ;;  %v2584_v44 = vld [vmem:[%s2425_s7 + $0x30] sm:$0xff]  ;;  %2978 = vst [vmem:[#allocation20_spill] sm:$0xff] %v2595_v47  ;;  %v2600_v48 = vld [vmem:[%s2425_s7 + $0x28] sm:$0xff]  ;;  %v2611_v51 = vld [vmem:[%s2425_s7 + $0x1a0] sm:$0xff] }
  0x83   : > { %1644 = vmatprep.subr.mxu1 %v2531_v26  ;;  %1610 = vmatpush3.msra.mxu0 %v2536_v27  ;;  %v2587_v45 = vld [vmem:[%s2425_s7 + $0x130] sm:$0xff]  ;;  %2979 = vst [vmem:[#allocation21_spill] sm:$0xff] %v2600_v48  ;;  %v2603_v49 = vld [vmem:[%s2425_s7 + $0x128] sm:$0xff]  ;;  %v2618_v53 = vld [vmem:[%s2425_s7 + $0x20] sm:$0xff] }
  0x84   : > { %1645 = vmatpush3.msra.mxu1 %v2539_v28  ;;  %1611 = vmatprep.subr.mxu0 %v2544_v29  ;;  %2980 = vst [vmem:[#allocation22_spill] sm:$0xff] %v2603_v49  ;;  %v2621_v54 = vld [vmem:[%s2425_s7 + $0x120] sm:$0xff]  ;;  %v2627_v56 = vld [vmem:[%s2425_s7 + $0x98] sm:$0xff]  ;;  %v2643_v61 = vld [vmem:[%s2425_s7 + $0x90] sm:$0xff] }
  0x85   : > { %1646 = vmatprep.subr.mxu1 %v2547_v30  ;;  %1612 = vmatpush3.msra.mxu0 %v2552_v34  ;;  %2982 = vst [vmem:[#allocation24_spill] sm:$0xff] %v2621_v54  ;;  %v397_v55 = vld [vmem:[%s2412_s27] sm:$0xff]  ;;  %v2630_v57 = vld [vmem:[%s2425_s7 + $0x198] sm:$0xff]  ;;  %2986 = vst [vmem:[#allocation28_spill] sm:$0xff] %v2643_v61 }
  0x86   : > { %1647 = vmatpush3.msra.mxu1 %v2555_v35  ;;  %1613 = vmatprep.subr.mxu0 %v2560_v36  ;;  %2983 = vst [vmem:[#allocation25_spill] sm:$0xff] %v2630_v57  ;;  %v529_v58 = vcombine.high %v397_v55, %v397_v55  ;;  %v2635_v59 = vld [vmem:[%s2425_s7 + $0x18] sm:$0xff]  ;;  %v2646_v62 = vld [vmem:[%s2425_s7 + $0x190] sm:$0xff]  ;;  %v536_v63 = vrot.slane %v397_v55, %v2613_v52  ;;  %v2661_v33 = vld [vmem:[%s2425_s7 + $0x88] sm:$0xff] }
  0x87   : > { %1648 = vmatprep.subr.mxu1 %v2563_v37  ;;  %1614 = vmatpush3.msra.mxu0 %v2568_v38  ;;  %2984 = vst [vmem:[#allocation26_spill] sm:$0xff] %v2635_v59  ;;  %v2638_v60 = vld [vmem:[%s2425_s7 + $0x118] sm:$0xff]  ;;  %2987 = vst [vmem:[#allocation29_spill] sm:$0xff] %v2646_v62  ;;  %v2652_v0 = vld [vmem:[%s2425_s7 + $0x10] sm:$0xff] }
  0x88   : > { %1649 = vmatpush3.msra.mxu1 %v2571_v39  ;;  %1615 = vmatprep.subr.mxu0 %v2576_v40  ;;  %2985 = vst [vmem:[#allocation27_spill] sm:$0xff] %v2638_v60  ;;  %v2655_v31 = vld [vmem:[%s2425_s7 + $0x110] sm:$0xff]  ;;  %v543_v32 = vrot.slane %v529_v58, %v2613_v52  ;;  %v2664_v42 = vld [vmem:[%s2425_s7 + $0x188] sm:$0xff]  ;;  %v2677_v58 = vld [vmem:[%s2425_s7 + $0x80] sm:$0xff] }
  0x89   : > { %1650 = vmatprep.subr.mxu1 %v2579_v41  ;;  %1616 = vmatpush3.msra.mxu0 %v2584_v44  ;;  %v2669_v43 = vld [vmem:[%s2425_s7 + $0x8] sm:$0xff] }
  0x8a   : > { %1651 = vmatpush3.msra.mxu1 %v2587_v45  ;;  %1617 = vmatprep.subr.mxu0 %v2592_v46  ;;  %v2672_v55 = vld [vmem:[%s2425_s7 + $0x108] sm:$0xff] }
  0x8b   : > { %1652 = vmatprep.subr.mxu1 %v2595_v47  ;;  %1618 = vmatpush3.msra.mxu0 %v2600_v48 }
  0x8c   : > { %1653 = vmatpush3.msra.mxu1 %v2603_v49  ;;  %1619 = vmatprep.subr.mxu0 %v2608_v50 }
  0x8d   : > { %1654 = vmatprep.subr.mxu1 %v2611_v51  ;;  %1620 = vmatpush3.msra.mxu0 %v2618_v53 }
  0x8e   : > { %1655 = vmatpush3.msra.mxu1 %v2621_v54  ;;  %1621 = vmatprep.subr.mxu0 %v2627_v56 }
  0x8f   : > { %1656 = vmatprep.subr.mxu1 %v2630_v57  ;;  %1622 = vmatpush3.msra.mxu0 %v2635_v59  ;;  %v544_v59 = vcombine.high %v536_v63, %v536_v63  ;;  %v2690_v57 = vld [vmem:[%s2425_s7 + $0x100] sm:$0xff] }
  0x90   : > { %1657 = vmatpush3.msra.mxu1 %v2638_v60  ;;  %1623 = vmatprep.subr.mxu0 %v2643_v61  ;;  %v2680_v60 = vld [vmem:[%s2425_s7 + $0x180] sm:$0xff] }
  0x91   : > { %1658 = vmatprep.subr.mxu1 %v2646_v62  ;;  %1624 = vmatpush3.msra.mxu0 %v2652_v0  ;;  %v2685_v61 = vld [vmem:[%s2425_s7] sm:$0xff]  ;;  %v545_v62 = vcombine.high %v543_v32, %v543_v32 }
  0x92   : > { %1659 = vmatpush3.msra.mxu1 %v2655_v31  ;;  %1625 = vmatprep.subr.mxu0 %v2661_v33 }
  0x93   : > { %1660 = vmatprep.subr.mxu1 %v2664_v42  ;;  %1626 = vmatpush3.msra.mxu0 %v2669_v43 }
  0x94   : > { %1661 = vmatpush3.msra.mxu1 %v2672_v55  ;;  %1627 = vmatprep.subr.mxu0 %v2677_v58 }
  0x95   : > { %1662 = vmatprep.subr.mxu1 %v2680_v60  ;;  %1628 = vmatpush3.msra.mxu0 %v2685_v61 }
  0x96   : > { %614 = vmatprep.mubr.f32.mxu0 %v544_v59  ;;  %1663 = vmatpush3.msra.mxu1 %v2690_v57  ;;  %v398_v59 = vld [vmem:[%s2419_s6] sm:$0xff] }
  0x97   : > { %684 = vmatprep.mubr.f32.mxu1 %v545_v62  ;;  %615 = vmatmul.mubr.f32.vlgmr.msra.gmra.mxu0 %v536_v63  ;;  %v694_v62 = vcombine.high %v398_v59, %v398_v59  ;;  %v701_v63 = vrot.slane %v398_v59, %v2613_v52 }
  0x98   : > { %685 = vmatmul.mubr.f32.vlgmr.msra.gmra.mxu1 %v543_v32  ;;  %1667 = vmatprep.subr.mxu0 %v2436_v1  ;;  %v2988_v32 = vld [vmem:[#allocation25_spill] sm:$0xff] }
  0x99   : > { %1702 = vmatprep.subr.mxu1 %v2439_v2  ;;  %1668 = vmatpush3.msra.mxu0 %v2442_v3 }
  0x9a   : > { %1703 = vmatpush3.msra.mxu1 %v2447_v4  ;;  %1669 = vmatprep.subr.mxu0 %v2450_v5 }
  0x9b   : > { %1704 = vmatprep.subr.mxu1 %v2453_v6  ;;  %1670 = vmatpush3.msra.mxu0 %v2458_v7 }
  0x9c   : > { %1705 = vmatpush3.msra.mxu1 %v2461_v8  ;;  %1671 = vmatprep.subr.mxu0 %v2464_v9 }
  0x9d   : > { %1706 = vmatprep.subr.mxu1 %v2469_v10  ;;  %1672 = vmatpush3.msra.mxu0 %v2472_v11 }
  0x9e   : > { %1707 = vmatpush3.msra.mxu1 %v2475_v12  ;;  %1673 = vmatprep.subr.mxu0 %v2480_v13 }
  0x9f   : > { %1708 = vmatprep.subr.mxu1 %v2483_v14  ;;  %1674 = vmatpush3.msra.mxu0 %v2488_v15 }
  0xa0   : > { %1709 = vmatpush3.msra.mxu1 %v2491_v16  ;;  %1675 = vmatprep.subr.mxu0 %v2496_v17 }
  0xa1   : > { %1710 = vmatprep.subr.mxu1 %v2499_v18  ;;  %1676 = vmatpush3.msra.mxu0 %v2504_v19 }
  0xa2   : > { %1711 = vmatpush3.msra.mxu1 %v2507_v20  ;;  %1677 = vmatprep.subr.mxu0 %v2512_v21 }
  0xa3   : > { %1712 = vmatprep.subr.mxu1 %v2515_v22  ;;  %1678 = vmatpush3.msra.mxu0 %v2520_v23 }
  0xa4   : > { %1713 = vmatpush3.msra.mxu1 %v2523_v24  ;;  %1679 = vmatprep.subr.mxu0 %v2528_v25 }
  0xa5   : > { %1714 = vmatprep.subr.mxu1 %v2531_v26  ;;  %1680 = vmatpush3.msra.mxu0 %v2536_v27 }
  0xa6   : > { %1715 = vmatpush3.msra.mxu1 %v2539_v28  ;;  %1681 = vmatprep.subr.mxu0 %v2544_v29 }
  0xa7   : > { %1716 = vmatprep.subr.mxu1 %v2547_v30  ;;  %1682 = vmatpush3.msra.mxu0 %v2552_v34 }
  0xa8   : > { %1717 = vmatpush3.msra.mxu1 %v2555_v35  ;;  %1683 = vmatprep.subr.mxu0 %v2560_v36 }
  0xa9   : > { %1718 = vmatprep.subr.mxu1 %v2563_v37  ;;  %1684 = vmatpush3.msra.mxu0 %v2568_v38 }
  0xaa   : > { %1719 = vmatpush3.msra.mxu1 %v2571_v39  ;;  %1685 = vmatprep.subr.mxu0 %v2576_v40 }
  0xab   : > { %1720 = vmatprep.subr.mxu1 %v2579_v41  ;;  %1686 = vmatpush3.msra.mxu0 %v2584_v44 }
  0xac   : > { %1721 = vmatpush3.msra.mxu1 %v2587_v45  ;;  %1687 = vmatprep.subr.mxu0 %v2592_v46  ;;  %v2989_v46 = vld [vmem:[#allocation26_spill] sm:$0xff] }
  0xad   : > { %1722 = vmatprep.subr.mxu1 %v2595_v47  ;;  %1688 = vmatpush3.msra.mxu0 %v2600_v48  ;;  %v708_v47 = vrot.slane %v694_v62, %v2613_v52  ;;  %v2990_v48 = vld [vmem:[#allocation27_spill] sm:$0xff]  ;;  %v506_v62 = vld [vmem:[%s2427_s17 + $0x158] sm:$0xff] }
  0xae   : > { %1723 = vmatpush3.msra.mxu1 %v2603_v49  ;;  %1689 = vmatprep.subr.mxu0 %v2608_v50  ;;  %v2991_v49 = vld [vmem:[#allocation28_spill] sm:$0xff]  ;;  %v2992_v50 = vld [vmem:[#allocation29_spill] sm:$0xff] }
  0xaf   : > { %1724 = vmatprep.subr.mxu1 %v2611_v51  ;;  %1690 = vmatpush3.msra.mxu0 %v2618_v53 }
  0xb0   : > { %1725 = vmatpush3.msra.mxu1 %v2621_v54  ;;  %1691 = vmatprep.subr.mxu0 %v2627_v56  ;;  %v709_v54 = vcombine.high %v701_v63, %v701_v63 }
  0xb1   : > { %1726 = vmatprep.subr.mxu1 %v2988_v32  ;;  %1692 = vmatpush3.msra.mxu0 %v2989_v46  ;;  %v710_v32 = vcombine.high %v708_v47, %v708_v47 }
  0xb2   : > { %1727 = vmatpush3.msra.mxu1 %v2990_v48  ;;  %1693 = vmatprep.subr.mxu0 %v2991_v49 }
  0xb3   : > { %1728 = vmatprep.subr.mxu1 %v2992_v50  ;;  %1694 = vmatpush3.msra.mxu0 %v2652_v0 }
  0xb4   : > { %1729 = vmatpush3.msra.mxu1 %v2655_v31  ;;  %1695 = vmatprep.subr.mxu0 %v2661_v33 }
  0xb5   : > { %1730 = vmatprep.subr.mxu1 %v2664_v42  ;;  %1696 = vmatpush3.msra.mxu0 %v2669_v43 }
  0xb6   : > { %1731 = vmatpush3.msra.mxu1 %v2672_v55  ;;  %1697 = vmatprep.subr.mxu0 %v2677_v58 }
  0xb7   : > { %1732 = vmatprep.subr.mxu1 %v2680_v60  ;;  %1698 = vmatpush3.msra.mxu0 %v2685_v61 }
  0xb8   : > { %779 = vmatprep.mubr.f32.mxu0 %v709_v54  ;;  %1733 = vmatpush3.msra.mxu1 %v2690_v57  ;;  %v492_v54 = vld [vmem:[%s2427_s17 + $0xe8] sm:$0xff] }
  0xb9   : > { %849 = vmatprep.mubr.f32.mxu1 %v710_v32  ;;  %780 = vmatmul.mubr.f32.vlgmr.msra.gmra.mxu0 %v701_v63  ;;  %v503_v63 = vld [vmem:[%s2427_s17 + $0x140] sm:$0xff]  ;;  %v505_v32 = vld [vmem:[%s2427_s17 + $0x150] sm:$0xff] }
  0xba   : > { %850 = vmatmul.mubr.f32.vlgmr.msra.gmra.mxu1 %v708_v47  ;;  %1737 = vmatprep.subr.mxu0 %v2436_v1  ;;  %v1196_v1 = vmul.f32 %v398_v59, %v398_v59  ;;  %v486_v47 = vld [vmem:[%s2427_s17 + $0xb8] sm:$0xff]  ;;  %v504_v59 = vld [vmem:[%s2427_s17 + $0x148] sm:$0xff] }
  0xbb   : > { %1817 = vmatprep.subr.mxu1 %v2439_v2  ;;  %1738 = vmatpush3.msra.mxu0 %v2442_v3 }
  0xbc   : > { %1818 = vmatpush3.msra.mxu1 %v2447_v4  ;;  %1739 = vmatprep.subr.mxu0 %v2450_v5  ;;  %v1205_v2 = vrot.slane %v1196_v1, %v2613_v52  ;;  %v1198_v3 = vcombine.high %v1196_v1, %v1196_v1  ;;  %v2993_v5 = vld [vmem:[#allocation19_spill] sm:$0xff]  ;;  %v508_v1 = vld [vmem:[%s2427_s17 + $0x168] sm:$0xff] }
  0xbd   : > { %1819 = vmatprep.subr.mxu1 %v2453_v6  ;;  %1740 = vmatpush3.msra.mxu0 %v2458_v7  ;;  %v2994_v6 = vld [vmem:[#allocation20_spill] sm:$0xff] }
  0xbe   : > { %1820 = vmatpush3.msra.mxu1 %v2461_v8  ;;  %1741 = vmatprep.subr.mxu0 %v2464_v9  ;;  %v1213_v4 = vcombine.high %v1205_v2, %v1205_v2  ;;  %v1212_v7 = vrot.slane %v1198_v3, %v2613_v52  ;;  %v1220_v8 = vsel %vm1219_vm1, %v1205_v2, 0.0  ;;  %v487_v52 = vld [vmem:[%s2427_s17 + $0xc0] sm:$0xff]  ;;  %v510_v2 = vld [vmem:[%s2427_s17 + $0x178] sm:$0xff] }
  0xbf   : > { %1821 = vmatprep.subr.mxu1 %v2469_v10  ;;  %1742 = vmatpush3.msra.mxu0 %v2472_v11  ;;  %v2995_v10 = vld [vmem:[#allocation21_spill] sm:$0xff]  ;;  %v2996_v11 = vld [vmem:[#allocation22_spill] sm:$0xff]  ;;  %v507_v3 = vld [vmem:[%s2427_s17 + $0x160] sm:$0xff] }
  0xc0   : > { %1822 = vmatpush3.msra.mxu1 %v2475_v12  ;;  %1743 = vmatprep.subr.mxu0 %v2480_v13  ;;  %v1221_v9 = vsel %vm1219_vm1, %v1213_v4, 0.0  ;;  %v2997_v12 = vld [vmem:[#allocation23_spill] sm:$0xff]  ;;  %v2998_v13 = vld [vmem:[#allocation24_spill] sm:$0xff]  ;;  %v509_v4 = vld [vmem:[%s2427_s17 + $0x170] sm:$0xff] }
  0xc1   : > { %1823 = vmatprep.subr.mxu1 %v2483_v14  ;;  %1744 = vmatpush3.msra.mxu0 %v2488_v15  ;;  %v1222_v14 = vadd.f32 %v1221_v9, %v1220_v8  ;;  %v2999_v15 = vld [vmem:[#allocation25_spill] sm:$0xff]  ;;  %v516_v9 = vld [vmem:[%s2427_s17 + $0x1a8] sm:$0xff] }
  0xc2   : > { %1824 = vmatpush3.msra.mxu1 %v2491_v16  ;;  %1745 = vmatprep.subr.mxu0 %v2496_v17  ;;  %v1214_v16 = vcombine.high %v1212_v7, %v1212_v7  ;;  %v1223_v17 = vsel %vm1219_vm1, %v1212_v7, 0.0  ;;  %v511_v7 = vld [vmem:[%s2427_s17 + $0x180] sm:$0xff]  ;;  %v513_v8 = vld [vmem:[%s2427_s17 + $0x190] sm:$0xff] }
  0xc3   : > { %1825 = vmatprep.subr.mxu1 %v2499_v18  ;;  %1746 = vmatpush3.msra.mxu0 %v2504_v19  ;;  %v1224_v18 = vadd.f32 %v1223_v17, %v1222_v14  ;;  %v464_v19 = vld [vmem:[%s2427_s17 + $0x8] sm:$0xff]  ;;  %v522_v14 = vld [vmem:[%s2427_s17 + $0x1d8] sm:$0xff] }
  0xc4   : > { %1826 = vmatpush3.msra.mxu1 %v2507_v20  ;;  %1747 = vmatprep.subr.mxu0 %v2512_v21  ;;  %v1225_v20 = vsel %vm1219_vm1, %v1214_v16, 0.0  ;;  %v466_v21 = vld [vmem:[%s2427_s17 + $0x18] sm:$0xff]  ;;  %v521_v16 = vld [vmem:[%s2427_s17 + $0x1d0] sm:$0xff]  ;;  %v524_v17 = vld [vmem:[%s2427_s17 + $0x1e8] sm:$0xff] }
  0xc5   : > { %1827 = vmatprep.subr.mxu1 %v2515_v22  ;;  %1748 = vmatpush3.msra.mxu0 %v2520_v23  ;;  %v463_v22 = vld [vmem:[%s2427_s17] sm:$0xff]  ;;  %v465_v23 = vld [vmem:[%s2427_s17 + $0x10] sm:$0xff] }
  0xc6   : > { %1828 = vmatpush3.msra.mxu1 %v2523_v24  ;;  %1749 = vmatprep.subr.mxu0 %v2528_v25  ;;  %v468_v24 = vld [vmem:[%s2427_s17 + $0x28] sm:$0xff]  ;;  %v470_v25 = vld [vmem:[%s2427_s17 + $0x38] sm:$0xff] }
  0xc7   : > { %1829 = vmatprep.subr.mxu1 %v2531_v26  ;;  %1750 = vmatpush3.msra.mxu0 %v2536_v27  ;;  %v1226_v26 = vadd.f32 %v1225_v20, %v1224_v18  ;;  %v467_v27 = vld [vmem:[%s2427_s17 + $0x20] sm:$0xff]  ;;  %v526_v18 = vld [vmem:[%s2427_s17 + $0x1f8] sm:$0xff]  ;;  %v525_v20 = vld [vmem:[%s2427_s17 + $0x1f0] sm:$0xff] }
  0xc8   : > { %1830 = vmatpush3.msra.mxu1 %v2539_v28  ;;  %1751 = vmatprep.subr.mxu0 %v2544_v29  ;;  %v469_v28 = vld [vmem:[%s2427_s17 + $0x30] sm:$0xff]  ;;  %v472_v29 = vld [vmem:[%s2427_s17 + $0x48] sm:$0xff] }
  0xc9   : > { %1831 = vmatprep.subr.mxu1 %v2547_v30  ;;  %1752 = vmatpush3.msra.mxu0 %v2552_v34  ;;  %v474_v30 = vld [vmem:[%s2427_s17 + $0x58] sm:$0xff]  ;;  %v471_v34 = vld [vmem:[%s2427_s17 + $0x40] sm:$0xff] }
  0xca   : > { %1832 = vmatpush3.msra.mxu1 %v2555_v35  ;;  %1753 = vmatprep.subr.mxu0 %v2560_v36  ;;  %v473_v35 = vld [vmem:[%s2427_s17 + $0x50] sm:$0xff]  ;;  %v476_v36 = vld [vmem:[%s2427_s17 + $0x68] sm:$0xff] }
  0xcb   : > { %1833 = vmatprep.subr.mxu1 %v2563_v37  ;;  %1754 = vmatpush3.msra.mxu0 %v2568_v38  ;;  %v478_v37 = vld [vmem:[%s2427_s17 + $0x78] sm:$0xff]  ;;  %v475_v38 = vld [vmem:[%s2427_s17 + $0x60] sm:$0xff] }
  0xcc   : > { %1834 = vmatpush3.msra.mxu1 %v2571_v39  ;;  %1755 = vmatprep.subr.mxu0 %v2576_v40  ;;  %v477_v39 = vld [vmem:[%s2427_s17 + $0x70] sm:$0xff]  ;;  %v480_v40 = vld [vmem:[%s2427_s17 + $0x88] sm:$0xff] }
  0xcd   : > { %1835 = vmatprep.subr.mxu1 %v2579_v41  ;;  %1756 = vmatpush3.msra.mxu0 %v2584_v44  ;;  %v482_v41 = vld [vmem:[%s2427_s17 + $0x98] sm:$0xff]  ;;  %v479_v44 = vld [vmem:[%s2427_s17 + $0x80] sm:$0xff] }
  0xce   : > { %1836 = vmatpush3.msra.mxu1 %v2587_v45  ;;  %1757 = vmatprep.subr.mxu0 %v2993_v5  ;;  %v481_v45 = vld [vmem:[%s2427_s17 + $0x90] sm:$0xff]  ;;  %v512_v5 = vld [vmem:[%s2427_s17 + $0x188] sm:$0xff] }
  0xcf   : > { %1837 = vmatprep.subr.mxu1 %v2994_v6  ;;  %1758 = vmatpush3.msra.mxu0 %v2995_v10  ;;  %v514_v6 = vld [vmem:[%s2427_s17 + $0x198] sm:$0xff] }
  0xd0   : > { %1838 = vmatpush3.msra.mxu1 %v2996_v11  ;;  %1759 = vmatprep.subr.mxu0 %v2997_v12  ;;  %v518_v10 = vld [vmem:[%s2427_s17 + $0x1b8] sm:$0xff]  ;;  %v515_v11 = vld [vmem:[%s2427_s17 + $0x1a0] sm:$0xff]  ;;  %v517_v12 = vld [vmem:[%s2427_s17 + $0x1b0] sm:$0xff] }
  0xd1   : > { %1839 = vmatprep.subr.mxu1 %v2611_v51  ;;  %1760 = vmatpush3.msra.mxu0 %v2618_v53  ;;  %v490_v51 = vld [vmem:[%s2427_s17 + $0xd8] sm:$0xff]  ;;  %v489_v53 = vld [vmem:[%s2427_s17 + $0xd0] sm:$0xff] }
  0xd2   : > { %1840 = vmatpush3.msra.mxu1 %v2998_v13  ;;  %1761 = vmatprep.subr.mxu0 %v2627_v56  ;;  %v494_v56 = vld [vmem:[%s2427_s17 + $0xf8] sm:$0xff]  ;;  %v520_v13 = vld [vmem:[%s2427_s17 + $0x1c8] sm:$0xff] }
  0xd3   : > { %1841 = vmatprep.subr.mxu1 %v2999_v15  ;;  %1762 = vmatpush3.msra.mxu0 %v2989_v46  ;;  %v484_v46 = vld [vmem:[%s2427_s17 + $0xa8] sm:$0xff]  ;;  %v519_v15 = vld [vmem:[%s2427_s17 + $0x1c0] sm:$0xff] }
  0xd4   : > { %1842 = vmatpush3.msra.mxu1 %v2990_v48  ;;  %1763 = vmatprep.subr.mxu0 %v2991_v49  ;;  %v483_v48 = vld [vmem:[%s2427_s17 + $0xa0] sm:$0xff]  ;;  %v485_v49 = vld [vmem:[%s2427_s17 + $0xb0] sm:$0xff] }
  0xd5   : > { %1843 = vmatprep.subr.mxu1 %v2992_v50  ;;  %1764 = vmatpush3.msra.mxu0 %v2652_v0  ;;  %v488_v50 = vld [vmem:[%s2427_s17 + $0xc8] sm:$0xff]  ;;  %v498_v0 = vld [vmem:[%s2427_s17 + $0x118] sm:$0xff] }
  0xd6   : > { %1844 = vmatpush3.msra.mxu1 %v2655_v31  ;;  %1765 = vmatprep.subr.mxu0 %v2661_v33  ;;  %v495_v31 = vld [vmem:[%s2427_s17 + $0x100] sm:$0xff]  ;;  %v497_v33 = vld [vmem:[%s2427_s17 + $0x110] sm:$0xff] }
  0xd7   : > { %1845 = vmatprep.subr.mxu1 %v2664_v42  ;;  %1766 = vmatpush3.msra.mxu0 %v2669_v43  ;;  %v500_v42 = vld [vmem:[%s2427_s17 + $0x128] sm:$0xff]  ;;  %v502_v43 = vld [vmem:[%s2427_s17 + $0x138] sm:$0xff] }
  0xd8   : > { %1846 = vmatpush3.msra.mxu1 %v2672_v55  ;;  %1767 = vmatprep.subr.mxu0 %v2677_v58  ;;  %v499_v55 = vld [vmem:[%s2427_s17 + $0x120] sm:$0xff]  ;;  %v501_v58 = vld [vmem:[%s2427_s17 + $0x130] sm:$0xff] }
  0xd9   : > { %1847 = vmatprep.subr.mxu1 %v2680_v60  ;;  %1768 = vmatpush3.msra.mxu0 %v2685_v61  ;;  %v493_v60 = vld [vmem:[%s2427_s17 + $0xf0] sm:$0xff]  ;;  %v496_v61 = vld [vmem:[%s2427_s17 + $0x108] sm:$0xff] }
  0xda   : > { %937 = vmatprep.mubr.f32.mxu0 %v464_v19  ;;  %1848 = vmatpush3.msra.mxu1 %v2690_v57  ;;  %v491_v57 = vld [vmem:[%s2427_s17 + $0xe0] sm:$0xff] }
  0xdb   : > { %1082 = vmatprep.mubr.f32.mxu1 %v466_v21  ;;  %938 = vmatmul.mubr.f32.vlgmr.msra.gmra.mxu0 %v463_v22  ;;  %v523_v19 = vld [vmem:[%s2427_s17 + $0x1e0] sm:$0xff] }
  0xdc   : > { %1083 = vmatmul.mubr.f32.vlgmr.msra.gmra.mxu1 %v465_v23  ;;  %942 = vmatprep.mubr.f32.mxu0 %v468_v24 }
  0xdd   : > { %1087 = vmatprep.mubr.f32.mxu1 %v470_v25  ;;  %1227 = vadd.xlane.f32.xlu0 %v1226_v26 }
  0xdf   : > { %943 = vmatmul.mubr.f32.gmra.mxu0 %v467_v27  ;;  %v527_v27 = vld [vmem:[#allocation2] sm:$0x3] }
  0xe0   : > { %1088 = vmatmul.mubr.f32.gmra.mxu1 %v469_v28  ;;  %947 = vmatprep.mubr.f32.mxu0 %v472_v29 }
  0xe1   : > { %1092 = vmatprep.mubr.f32.mxu1 %v474_v30  ;;  %v1195_v30 = vld [vmem:[#allocation5] sm:$0x3] }
  0xe3   : > { %948 = vmatmul.mubr.f32.gmra.mxu0 %v471_v34 }
  0xe4   : > { %1093 = vmatmul.mubr.f32.gmra.mxu1 %v473_v35  ;;  %952 = vmatprep.mubr.f32.mxu0 %v476_v36 }
  0xe5   : > { %1097 = vmatprep.mubr.f32.mxu1 %v478_v37 }
  0xe7   : > { %953 = vmatmul.mubr.f32.gmra.mxu0 %v475_v38 }
  0xe8   : > { %1098 = vmatmul.mubr.f32.gmra.mxu1 %v477_v39  ;;  %957 = vmatprep.mubr.f32.mxu0 %v480_v40 }
  0xe9   : > { %1102 = vmatprep.mubr.f32.mxu1 %v482_v41 }
  0xeb   : > { %958 = vmatmul.mubr.f32.gmra.mxu0 %v479_v44  ;;  %v692_v44 = vld [vmem:[#allocation3] sm:$0x3] }
  0xec   : > { %1103 = vmatmul.mubr.f32.gmra.mxu1 %v481_v45  ;;  %962 = vmatprep.mubr.f32.mxu0 %v484_v46 }
  0xed   : > { %1107 = vmatprep.mubr.f32.mxu1 %v486_v47 }
  0xef   : > { %963 = vmatmul.mubr.f32.gmra.mxu0 %v483_v48 }
  0xf0   : > { %1108 = vmatmul.mubr.f32.gmra.mxu1 %v485_v49  ;;  %967 = vmatprep.mubr.f32.mxu0 %v488_v50 }
  0xf1   : > { %1112 = vmatprep.mubr.f32.mxu1 %v490_v51 }
  0xf3   : > { %968 = vmatmul.mubr.f32.gmra.mxu0 %v487_v52 }
  0xf4   : > { %1113 = vmatmul.mubr.f32.gmra.mxu1 %v489_v53  ;;  %972 = vmatprep.mubr.f32.mxu0 %v492_v54  ;;  %v857_v53 = vld [vmem:[#allocation4 + $0x30] sm:$0xff] }
  0xf5   : > { %1117 = vmatprep.mubr.f32.mxu1 %v494_v56 }
  0xf7   : > { %973 = vmatmul.mubr.f32.gmra.mxu0 %v491_v57 }
  0xf8   : > { %1118 = vmatmul.mubr.f32.gmra.mxu1 %v493_v60  ;;  %977 = vmatprep.mubr.f32.mxu0 %v496_v61 }
  0xf9   : > { %1122 = vmatprep.mubr.f32.mxu1 %v498_v0 }
  0xfb   : > { %978 = vmatmul.mubr.f32.gmra.mxu0 %v495_v31 }
  0xfc   : > { %1123 = vmatmul.mubr.f32.gmra.mxu1 %v497_v33  ;;  %982 = vmatprep.mubr.f32.mxu0 %v500_v42  ;;  %v858_v42 = vld [vmem:[#allocation4] sm:$0xff] }
  0xfd   : > { %1127 = vmatprep.mubr.f32.mxu1 %v502_v43 }
  0xff   : > { %983 = vmatmul.mubr.f32.gmra.mxu0 %v499_v55 }
 0x100   : > { %1128 = vmatmul.mubr.f32.gmra.mxu1 %v501_v58  ;;  %987 = vmatprep.mubr.f32.mxu0 %v504_v59 }
 0x101   : > { %1132 = vmatprep.mubr.f32.mxu1 %v506_v62 }
 0x103   : > { %988 = vmatmul.mubr.f32.gmra.mxu0 %v503_v63 }
 0x104   : > { %1133 = vmatmul.mubr.f32.gmra.mxu1 %v505_v32  ;;  %992 = vmatprep.mubr.f32.mxu0 %v508_v1 }
 0x105   : > { %1137 = vmatprep.mubr.f32.mxu1 %v510_v2  ;;  %v859_v2 = vld [vmem:[#allocation4 + $0x58] sm:$0xff] }
 0x107   : > { %993 = vmatmul.mubr.f32.gmra.mxu0 %v507_v3 }
 0x108   : > { %1138 = vmatmul.mubr.f32.gmra.mxu1 %v509_v4  ;;  %997 = vmatprep.mubr.f32.mxu0 %v512_v5 }
 0x109   : > { %1142 = vmatprep.mubr.f32.mxu1 %v514_v6 }
 0x10b   : > { %998 = vmatmul.mubr.f32.gmra.mxu0 %v511_v7 }
 0x10c   : > { %1143 = vmatmul.mubr.f32.gmra.mxu1 %v513_v8  ;;  %1002 = vmatprep.mubr.f32.mxu0 %v516_v9 }
 0x10d   : > { %1147 = vmatprep.mubr.f32.mxu1 %v518_v10 }
 0x10f   : > { %1003 = vmatmul.mubr.f32.gmra.mxu0 %v515_v11  ;;  %v860_v11 = vld [vmem:[#allocation4 + $0x18] sm:$0xff] }
 0x110   : > { %1148 = vmatmul.mubr.f32.gmra.mxu1 %v517_v12  ;;  %1007 = vmatprep.mubr.f32.mxu0 %v520_v13 }
 0x111   : > { %1152 = vmatprep.mubr.f32.mxu1 %v522_v14 }
 0x113   : > { %1008 = vmatmul.mubr.f32.gmra.mxu0 %v519_v15 }
 0x114   : > { %1153 = vmatmul.mubr.f32.gmra.mxu1 %v521_v16  ;;  %1012 = vmatprep.mubr.f32.mxu0 %v524_v17 }
 0x115   : > { %1157 = vmatprep.mubr.f32.mxu1 %v526_v18 }
 0x117   : > { %1013 = vmatmul.mubr.f32.gmra.mxu0 %v523_v19 }
 0x118   : > { %1158 = vmatmul.mubr.f32.gmra.mxu1 %v525_v20  ;;  %v861_v20 = vld [vmem:[#allocation4 + $0x50] sm:$0xff] }
 0x157   : > { %v1629_v21 = vpop.f32.mrf.mxu0 }
 0x158   : > { %v1664_v22 = vpop.f32.mrf.mxu1 }
 0x159   : > { %v1630_v23 = vpop.f32.mrf.mxu0 }
 0x15a   : > { %v1665_v24 = vpop.f32.mrf.mxu1  ;;  %v1631_v25 = vadd.f32 %v1630_v23, %v1629_v21 }
 0x15b   : > { %v1666_v26 = vadd.f32 %v1665_v24, %v1664_v22 }
 0x15d   : > { %v687_v28 = vadd.f32 %v1666_v26, %v1631_v25 }
 0x15f   : > { %v690_v29 = vadd.f32 %v687_v28, %v527_v27 }
 0x161   : > { %691 = vst [vmem:[#allocation2] sm:$0x3] %v690_v29  ;;  %v862_v29 = vld [vmem:[#allocation4 + $0x68] sm:$0xff] }
 0x166   : > { %v1228_v34 = vpop.xlane.xlu0 %1227 }
 0x167   : > { %v1229_v35 = vadd.f32 %v1228_v34, %v1195_v30 }
 0x169   : > { %1231 = vst.msk [vmem:[#allocation5] sm:$0x3] %vm1230_vm2, %v1229_v35 }
 0x179   : > { %v1699_v36 = vpop.f32.mrf.mxu0 }
 0x17a   : > { %v1734_v37 = vpop.f32.mrf.mxu1 }
 0x17b   : > { %v1700_v38 = vpop.f32.mrf.mxu0 }
 0x17c   : > { %v1735_v39 = vpop.f32.mrf.mxu1  ;;  %v1701_v40 = vadd.f32 %v1700_v38, %v1699_v36 }
 0x17d   : > { %v1736_v41 = vadd.f32 %v1735_v39, %v1734_v37 }
 0x17f   : > { %v852_v45 = vadd.f32 %v1736_v41, %v1701_v40  ;;  %v863_v41 = vld [vmem:[#allocation4 + $0x8] sm:$0xff] }
 0x181   : > { %v855_v46 = vadd.f32 %v852_v45, %v692_v44 }
 0x183   : > { %856 = vst [vmem:[#allocation3] sm:$0x3] %v855_v46 }
 0x19b   : > { %v1769_v47 = vpop.f32.mrf.mxu0 }
 0x19c   : > { %v1849_v48 = vpop.f32.mrf.mxu1 }
 0x19d   : > { %v1770_v49 = vpop.f32.mrf.mxu0 }
 0x19e   : > { %v1850_v50 = vpop.f32.mrf.mxu1  ;;  %v1771_v51 = vadd.f32 %v1770_v49, %v1769_v47 }
 0x19f   : > { %v1851_v52 = vadd.f32 %v1850_v50, %v1849_v48  ;;  %v1772_v54 = vpop.f32.mrf.mxu0 }
 0x1a0   : > { %v1852_v56 = vpop.f32.mrf.mxu1 }
 0x1a1   : > { %v1085_v57 = vadd.f32 %v1851_v52, %v1771_v51  ;;  %v1773_v60 = vpop.f32.mrf.mxu0  ;;  %v864_v52 = vld [vmem:[#allocation4 + $0x48] sm:$0xff] }
 0x1a2   : > { %v1853_v61 = vpop.f32.mrf.mxu1  ;;  %v1774_v31 = vadd.f32 %v1773_v60, %v1772_v54 }
 0x1a3   : > { %v1163_v0 = vadd.f32 %v1085_v57, %v857_v53  ;;  %v1854_v33 = vadd.f32 %v1853_v61, %v1852_v56  ;;  %v1775_v43 = vpop.f32.mrf.mxu0 }
 0x1a4   : > { %v1855_v55 = vpop.f32.mrf.mxu1 }
 0x1a5   : > { %1179 = vst [vmem:[#allocation4 + $0x30] sm:$0xff] %v1163_v0  ;;  %v1090_v58 = vadd.f32 %v1854_v33, %v1774_v31  ;;  %v1776_v59 = vpop.f32.mrf.mxu0  ;;  %v865_v33 = vld [vmem:[#allocation4 + $0x40] sm:$0xff] }
 0x1a6   : > { %v1856_v62 = vpop.f32.mrf.mxu1  ;;  %v1777_v32 = vadd.f32 %v1776_v59, %v1775_v43 }
 0x1a7   : > { %v1164_v63 = vadd.f32 %v1090_v58, %v858_v42  ;;  %v1857_v1 = vadd.f32 %v1856_v62, %v1855_v55  ;;  %v1778_v3 = vpop.f32.mrf.mxu0 }
 0x1a8   : > { %v1858_v4 = vpop.f32.mrf.mxu1 }
 0x1a9   : > { %1180 = vst [vmem:[#allocation4] sm:$0xff] %v1164_v63  ;;  %v1095_v5 = vadd.f32 %v1857_v1, %v1777_v32  ;;  %v1779_v6 = vpop.f32.mrf.mxu0  ;;  %v866_v1 = vld [vmem:[#allocation4 + $0x20] sm:$0xff] }
 0x1aa   : > { %v1859_v7 = vpop.f32.mrf.mxu1  ;;  %v1780_v9 = vadd.f32 %v1779_v6, %v1778_v3 }
 0x1ab   : > { %v1165_v8 = vadd.f32 %v1095_v5, %v859_v2  ;;  %v1860_v10 = vadd.f32 %v1859_v7, %v1858_v4  ;;  %v1781_v12 = vpop.f32.mrf.mxu0 }
 0x1ac   : > { %v1861_v13 = vpop.f32.mrf.mxu1 }
 0x1ad   : > { %1181 = vst [vmem:[#allocation4 + $0x58] sm:$0xff] %v1165_v8  ;;  %v1100_v14 = vadd.f32 %v1860_v10, %v1780_v9  ;;  %v1782_v15 = vpop.f32.mrf.mxu0  ;;  %v867_v10 = vld [vmem:[#allocation4 + $0x10] sm:$0xff] }
 0x1ae   : > { %v1862_v16 = vpop.f32.mrf.mxu1  ;;  %v1783_v18 = vadd.f32 %v1782_v15, %v1781_v12 }
 0x1af   : > { %v1166_v17 = vadd.f32 %v1100_v14, %v860_v11  ;;  %v1863_v19 = vadd.f32 %v1862_v16, %v1861_v13  ;;  %v1784_v21 = vpop.f32.mrf.mxu0 }
 0x1b0   : > { %v1864_v22 = vpop.f32.mrf.mxu1 }
 0x1b1   : > { %1182 = vst [vmem:[#allocation4 + $0x18] sm:$0xff] %v1166_v17  ;;  %v1105_v23 = vadd.f32 %v1863_v19, %v1783_v18  ;;  %v1785_v24 = vpop.f32.mrf.mxu0  ;;  %v868_v19 = vld [vmem:[#allocation4 + $0x38] sm:$0xff] }
 0x1b2   : > { %v1865_v25 = vpop.f32.mrf.mxu1  ;;  %v1786_v27 = vadd.f32 %v1785_v24, %v1784_v21 }
 0x1b3   : > { %v1167_v26 = vadd.f32 %v1105_v23, %v861_v20  ;;  %v1866_v28 = vadd.f32 %v1865_v25, %v1864_v22  ;;  %v1787_v30 = vpop.f32.mrf.mxu0 }
 0x1b4   : > { %v1867_v34 = vpop.f32.mrf.mxu1 }
 0x1b5   : > { %1183 = vst [vmem:[#allocation4 + $0x50] sm:$0xff] %v1167_v26  ;;  %v1110_v35 = vadd.f32 %v1866_v28, %v1786_v27  ;;  %v1788_v36 = vpop.f32.mrf.mxu0  ;;  %v869_v28 = vld [vmem:[#allocation4 + $0x60] sm:$0xff] }
 0x1b6   : > { %v1868_v37 = vpop.f32.mrf.mxu1  ;;  %v1789_v39 = vadd.f32 %v1788_v36, %v1787_v30 }
 0x1b7   : > { %v1168_v38 = vadd.f32 %v1110_v35, %v862_v29  ;;  %v1869_v40 = vadd.f32 %v1868_v37, %v1867_v34  ;;  %v1790_v44 = vpop.f32.mrf.mxu0 }
 0x1b8   : > { %v1870_v45 = vpop.f32.mrf.mxu1 }
 0x1b9   : > { %1184 = vst [vmem:[#allocation4 + $0x68] sm:$0xff] %v1168_v38  ;;  %v1115_v46 = vadd.f32 %v1869_v40, %v1789_v39  ;;  %v1791_v47 = vpop.f32.mrf.mxu0  ;;  %v870_v40 = vld [vmem:[#allocation4 + $0x70] sm:$0xff] }
 0x1ba   : > { %v1871_v48 = vpop.f32.mrf.mxu1  ;;  %v1792_v50 = vadd.f32 %v1791_v47, %v1790_v44 }
 0x1bb   : > { %v1169_v49 = vadd.f32 %v1115_v46, %v863_v41  ;;  %v1872_v51 = vadd.f32 %v1871_v48, %v1870_v45  ;;  %v1793_v53 = vpop.f32.mrf.mxu0 }
 0x1bc   : > { %v1873_v54 = vpop.f32.mrf.mxu1 }
 0x1bd   : > { %1185 = vst [vmem:[#allocation4 + $0x8] sm:$0xff] %v1169_v49  ;;  %v1120_v56 = vadd.f32 %v1872_v51, %v1792_v50  ;;  %v1794_v57 = vpop.f32.mrf.mxu0  ;;  %v871_v51 = vld [vmem:[#allocation4 + $0x78] sm:$0xff] }
 0x1be   : > { %v1874_v60 = vpop.f32.mrf.mxu1  ;;  %v1795_v0 = vadd.f32 %v1794_v57, %v1793_v53 }
 0x1bf   : > { %v1170_v61 = vadd.f32 %v1120_v56, %v864_v52  ;;  %v1875_v31 = vadd.f32 %v1874_v60, %v1873_v54  ;;  %v1796_v42 = vpop.f32.mrf.mxu0 }
 0x1c0   : > { %v1876_v43 = vpop.f32.mrf.mxu1 }
 0x1c1   : > { %1186 = vst [vmem:[#allocation4 + $0x48] sm:$0xff] %v1170_v61  ;;  %v1125_v55 = vadd.f32 %v1875_v31, %v1795_v0  ;;  %v1797_v58 = vpop.f32.mrf.mxu0  ;;  %v872_v31 = vld [vmem:[#allocation4 + $0x28] sm:$0xff] }
 0x1c2   : > { %v1877_v59 = vpop.f32.mrf.mxu1  ;;  %v1798_v63 = vadd.f32 %v1797_v58, %v1796_v42 }
 0x1c3   : > { %v1171_v62 = vadd.f32 %v1125_v55, %v865_v33  ;;  %v1878_v32 = vadd.f32 %v1877_v59, %v1876_v43  ;;  %v1799_v2 = vpop.f32.mrf.mxu0 }
 0x1c4   : > { %v1879_v3 = vpop.f32.mrf.mxu1 }
 0x1c5   : > { %1187 = vst [vmem:[#allocation4 + $0x40] sm:$0xff] %v1171_v62  ;;  %v1130_v4 = vadd.f32 %v1878_v32, %v1798_v63  ;;  %v1800_v5 = vpop.f32.mrf.mxu0 }
 0x1c6   : > { %v1880_v6 = vpop.f32.mrf.mxu1  ;;  %v1801_v8 = vadd.f32 %v1800_v5, %v1799_v2 }
 0x1c7   : > { %v1172_v7 = vadd.f32 %v1130_v4, %v866_v1  ;;  %v1881_v9 = vadd.f32 %v1880_v6, %v1879_v3  ;;  %v1802_v11 = vpop.f32.mrf.mxu0 }
 0x1c8   : > { %v1882_v12 = vpop.f32.mrf.mxu1 }
 0x1c9   : > { %1188 = vst [vmem:[#allocation4 + $0x20] sm:$0xff] %v1172_v7  ;;  %v1135_v13 = vadd.f32 %v1881_v9, %v1801_v8  ;;  %v1803_v14 = vpop.f32.mrf.mxu0 }
 0x1ca   : > { %v1883_v15 = vpop.f32.mrf.mxu1  ;;  %v1804_v17 = vadd.f32 %v1803_v14, %v1802_v11 }
 0x1cb   : > { %v1173_v16 = vadd.f32 %v1135_v13, %v867_v10  ;;  %v1884_v18 = vadd.f32 %v1883_v15, %v1882_v12  ;;  %v1805_v20 = vpop.f32.mrf.mxu0 }
 0x1cc   : > { %v1885_v21 = vpop.f32.mrf.mxu1 }
 0x1cd   : > { %1189 = vst [vmem:[#allocation4 + $0x10] sm:$0xff] %v1173_v16  ;;  %v1140_v22 = vadd.f32 %v1884_v18, %v1804_v17  ;;  %v1806_v23 = vpop.f32.mrf.mxu0 }
 0x1ce   : > { %v1886_v24 = vpop.f32.mrf.mxu1  ;;  %v1807_v26 = vadd.f32 %v1806_v23, %v1805_v20 }
 0x1cf   : > { %v1174_v25 = vadd.f32 %v1140_v22, %v868_v19  ;;  %v1887_v27 = vadd.f32 %v1886_v24, %v1885_v21  ;;  %v1808_v29 = vpop.f32.mrf.mxu0 }
 0x1d0   : > { %v1888_v30 = vpop.f32.mrf.mxu1 }
 0x1d1   : > { %1190 = vst [vmem:[#allocation4 + $0x38] sm:$0xff] %v1174_v25  ;;  %v1145_v34 = vadd.f32 %v1887_v27, %v1807_v26  ;;  %v1809_v35 = vpop.f32.mrf.mxu0 }
 0x1d2   : > { %v1889_v36 = vpop.f32.mrf.mxu1  ;;  %v1810_v38 = vadd.f32 %v1809_v35, %v1808_v29 }
 0x1d3   : > { %v1175_v37 = vadd.f32 %v1145_v34, %v869_v28  ;;  %v1890_v39 = vadd.f32 %v1889_v36, %v1888_v30  ;;  %v1811_v41 = vpop.f32.mrf.mxu0 }
 0x1d4   : > { %v1891_v44 = vpop.f32.mrf.mxu1 }
 0x1d5   : > { %1191 = vst [vmem:[#allocation4 + $0x60] sm:$0xff] %v1175_v37  ;;  %v1150_v45 = vadd.f32 %v1890_v39, %v1810_v38  ;;  %v1812_v46 = vpop.f32.mrf.mxu0 }
 0x1d6   : > { %v1892_v47 = vpop.f32.mrf.mxu1  ;;  %v1813_v49 = vadd.f32 %v1812_v46, %v1811_v41 }
 0x1d7   : > { %v1176_v48 = vadd.f32 %v1150_v45, %v870_v40  ;;  %v1893_v50 = vadd.f32 %v1892_v47, %v1891_v44  ;;  %v1814_v52 = vpop.f32.mrf.mxu0 }
 0x1d8   : > { %v1894_v53 = vpop.f32.mrf.mxu1 }
 0x1d9   : > { %1192 = vst [vmem:[#allocation4 + $0x70] sm:$0xff] %v1176_v48  ;;  %v1155_v54 = vadd.f32 %v1893_v50, %v1813_v49  ;;  %v1815_v56 = vpop.f32.mrf.mxu0 }
 0x1da   : > { %v1895_v57 = vpop.f32.mrf.mxu1  ;;  %v1816_v61 = vadd.f32 %v1815_v56, %v1814_v52 }
 0x1db   : > { %v1177_v60 = vadd.f32 %v1155_v54, %v871_v51  ;;  %v1896_v0 = vadd.f32 %v1895_v57, %v1894_v53 }
 0x1dd   : > { %1193 = vst [vmem:[#allocation4 + $0x78] sm:$0xff] %v1177_v60  ;;  %v1160_v33 = vadd.f32 %v1896_v0, %v1816_v61  ;;  %1235 = sbr.rel (%p1587_p7) target bundleno = 1877 (0x755), region = 64 }
 0x1df   : > { %v1178_v42 = vadd.f32 %v1160_v33, %v872_v31 }
 0x1e1   : > { %1194 = vst [vmem:[#allocation4 + $0x28] sm:$0xff] %v1178_v42 }
 0x1e2   : > { %v1276_v43 = vld [vmem:[#allocation5] sm:$0x3]  ;;  %v2262_v55 = vmov 0   ;;  %v1236_v2 = vld [vmem:[#allocation2] sm:$0x3]  ;;  %v2263_v23 = vmov 0.0  }
 0x1e3   : > { %2040 = vset.pattern.permute.xlu0 %v2262_v55  ;;  %2041 = vrsqrt.f32 %v1276_v43  ;;  %vm1279_vm3 = vcmp.eq.f32.partialorder %v1276_v43, inf  ;;  %v1282_v59 = vand.u32 2147483648, %v1276_v43  ;;  %vm1281_vm4 = vcmp.eq.f32.partialorder %v1276_v43, 0.0  ;;  %v1588_v3 = vld [vmem:[%s2949_s4] ss:$0 sm:$0xff]  ;;  %1914 = vmatprep.subr.mxu0 %v2263_v23  ;;  %v1272_v26 = vld [vmem:[#allocation4 + $0x70] sm:$0xff] }
 0x1e4   : > { %v2901_v4 = vadd.f32 %v1588_v3, %v1236_v2  ;;  %v1275_v7 = vld [vmem:[#allocation3] sm:$0x3]  ;;  %v1271_v27 = vld [vmem:[#allocation4 + $0x60] sm:$0xff]  ;;  %v1269_v29 = vld [vmem:[#allocation4 + $0x10] sm:$0xff]  ;;  %vm2264_vm5 = vmmov 0  }
 0x1e5   : > { %v1273_v25 = vld [vmem:[#allocation4 + $0x78] sm:$0xff]  ;;  %v1268_v30 = vld [vmem:[#allocation4 + $0x20] sm:$0xff]  ;;  %v1266_v35 = vld [vmem:[#allocation4 + $0x48] sm:$0xff]  ;;  %1946 = vmatprep.mubr.msk.f32.mxu0 %vm2264_vm5, %v2263_v23 }
 0x1e6   : > { %v1245_v5 = vsel %vm1219_vm1, %v2901_v4, -inf  ;;  %v1270_v28 = vld [vmem:[#allocation4 + $0x38] sm:$0xff]  ;;  %v1267_v34 = vld [vmem:[#allocation4 + $0x40] sm:$0xff]  ;;  %v1265_v36 = vld [vmem:[#allocation4 + $0x8] sm:$0xff] }
 0x1e7   : > { %v1264_v37 = vld [vmem:[#allocation4 + $0x68] sm:$0xff]  ;;  %v1263_v38 = vld [vmem:[#allocation4 + $0x50] sm:$0xff]  ;;  %v1262_v39 = vld [vmem:[#allocation4 + $0x18] sm:$0xff] }
 0x1e8   : > { %v1274_v24 = vld [vmem:[#allocation4 + $0x28] sm:$0xff]  ;;  %v1261_v40 = vld [vmem:[#allocation4 + $0x58] sm:$0xff]  ;;  %v1260_v41 = vld [vmem:[#allocation4] sm:$0xff] }
 0x1e9   : > { %1915 = vmatpush3.msra.mxu0 %v1274_v24  ;;  %v1259_v44 = vld [vmem:[#allocation4 + $0x30] sm:$0xff] }
 0x1ea   : > { %1916 = vmatprep.subr.mxu0 %v2263_v23 }
 0x1eb   : > { %1917 = vmatpush3.msra.mxu0 %v1273_v25 }
 0x1ec   : > { %1918 = vmatprep.subr.mxu0 %v2263_v23 }
 0x1ed   : > { %1919 = vmatpush3.msra.mxu0 %v1272_v26 }
 0x1ee   : > { %1920 = vmatprep.subr.mxu0 %v2263_v23 }
 0x1ef   : > { %1921 = vmatpush3.msra.mxu0 %v1271_v27 }
 0x1f0   : > { %v2042_v58 = vpop.eup %2041  ;;  %1922 = vmatprep.subr.mxu0 %v2263_v23 }
 0x1f1   : > { %v1278_v62 = vmul.f32 %v2042_v58, %v1276_v43  ;;  %1923 = vmatpush3.msra.mxu0 %v1270_v28 }
 0x1f2   : > { %1924 = vmatprep.subr.mxu0 %v2263_v23 }
 0x1f3   : > { %v1280_v63 = vsel %vm1279_vm3, %v1276_v43, %v1278_v62  ;;  %1925 = vmatpush3.msra.mxu0 %v1269_v29 }
 0x1f4   : > { %v1283_v32 = vsel %vm1281_vm4, %v1282_v59, %v1280_v63  ;;  %1926 = vmatprep.subr.mxu0 %v2263_v23 }
 0x1f5   : > { %v1284_v1 = vadd.f32 1e-08, %v1283_v32  ;;  %1927 = vmatpush3.msra.mxu0 %v1268_v30 }
 0x1f6   : > { %1928 = vmatprep.subr.mxu0 %v2263_v23 }
 0x1f7   : > { %1287 = vperm.xlu0 %2040, %v1284_v1   ;;  %1929 = vmatpush3.msra.mxu0 %v1267_v34 }
 0x1f8   : > { %1930 = vmatprep.subr.mxu0 %v2263_v23 }
 0x1f9   : > { %1931 = vmatpush3.msra.mxu0 %v1266_v35 }
 0x1fa   : > { %1932 = vmatprep.subr.mxu0 %v2263_v23 }
 0x1fb   : > { %1933 = vmatpush3.msra.mxu0 %v1265_v36 }
 0x1fc   : > { %1934 = vmatprep.subr.mxu0 %v2263_v23 }
 0x1fd   : > { %1935 = vmatpush3.msra.mxu0 %v1264_v37 }
 0x1fe   : > { %1936 = vmatprep.subr.mxu0 %v2263_v23 }
 0x1ff   : > { %1937 = vmatpush3.msra.mxu0 %v1263_v38 }
 0x200   : > { %1938 = vmatprep.subr.mxu0 %v2263_v23 }
 0x201   : > { %1939 = vmatpush3.msra.mxu0 %v1262_v39 }
 0x202   : > { %1940 = vmatprep.subr.mxu0 %v2263_v23 }
 0x203   : > { %1941 = vmatpush3.msra.mxu0 %v1261_v40 }
 0x204   : > { %1942 = vmatprep.subr.mxu0 %v2263_v23 }
 0x205   : > { %1943 = vmatpush3.msra.mxu0 %v1260_v41 }
 0x206   : > { %1944 = vmatprep.subr.mxu0 %v2263_v23 }
 0x207   : > { %1945 = vmatpush3.msra.mxu0 %v1259_v44 }
 0x216   : > { %1246 = vmax.xlane.f32.xlu0 %v1245_v5 }
 0x272   : > { %v1288_v6 = vpop.permute.xlu0 %1287 }
 0x273   : > { %2043 = vrcp.f32 %v1288_v6 }
 0x280   : > { %v2044_v8 = vpop.eup %2043 }
 0x281   : > { %v1291_v9 = vmul.f32 %v2044_v8, %v1275_v7 }
 0x283   : > { %v1292_v10 = vmul.f32 10.0, %v1291_v9 }
 0x285   : > { %v1293_v11 = vadd.f32 %v1292_v10, %v2901_v4 }
 0x287   : > { %v1294_v12 = vsel %vm1219_vm1, %v1293_v11, -inf }
 0x288   : > { %1295 = vmax.xlane.f32.xlu1 %v1294_v12 }
 0x29f   : > { %v1247_v13 = vpop.xlane.xlu0 %1246 }
 0x2a0   : > { %v2908_v14 = vsub.f32 %v2901_v4, %v1247_v13 }
 0x2a2   : > { %v1249_v15 = vmul.f32 1.442695, %v2908_v14 }
 0x2a4   : > { %2045 = vpow2.f32 %v1249_v15 }
 0x2b1   : > { %v2046_v16 = vpop.eup %2045 }
 0x2b2   : > { %v1251_v17 = vsel %vm1219_vm1, %v2046_v16, 0.0 }
 0x2b3   : > { %1252 = vadd.xlane.f32.xlu1 %v1251_v17 }
 0x311   : > { %v1296_v18 = vpop.xlane.xlu1 %1295 }
 0x312   : > { %v2912_v19 = vsub.f32 %v1293_v11, %v1296_v18 }
 0x314   : > { %v1298_v20 = vmul.f32 1.442695, %v2912_v19 }
 0x316   : > { %2047 = vpow2.f32 %v1298_v20 }
 0x323   : > { %v2048_v21 = vpop.eup %2047 }
 0x324   : > { %v1300_v22 = vsel %vm1219_vm1, %v2048_v21, 0.0 }
 0x325   : > { %1301 = vadd.xlane.f32.xlu1 %v1300_v22 }
 0x33c   : > { %v1253_v45 = vpop.xlane.xlu1 %1252 }
 0x33d   : > { %2049 = vlog2.f32 %v1253_v45 }
 0x34a   : > { %v2050_v47 = vpop.eup %2049 }
 0x34b   : > { %v1255_v48 = vmul.f32 0.6931472, %v2050_v47 }
 0x34d   : > { %v1256_v49 = vsub.f32 %v2908_v14, %v1255_v48 }
 0x34f   : > { %v1257_v52 = vmul.f32 1.442695, %v1256_v49 }
 0x3ae   : > { %v1302_v46 = vpop.xlane.xlu1 %1301 }
 0x3af   : > { %2051 = vlog2.f32 %v1302_v46 }
 0x3b0   : > { %2053 = vpow2.f32 %v1257_v52 }
 0x3bc   : > { %v2052_v50 = vpop.eup %2051 }
 0x3bd   : > { %v1304_v51 = vmul.f32 0.6931472, %v2052_v50  ;;  %v2054_v56 = vpop.eup %2053 }
 0x3bf   : > { %v1305_v53 = vsub.f32 %v2912_v19, %v1304_v51 }
 0x3c1   : > { %v1306_v54 = vmul.f32 1.442695, %v1305_v53 }
 0x3c3   : > { %2055 = vpow2.f32 %v1306_v54 }
 0x3d0   : > { %v2056_v57 = vpop.eup %2055 }
 0x3d1   : > { %v1308_v60 = vsub.f32 %v2056_v57, %v2054_v56 }
 0x3d3   : > { %v1309_v61 = vmul.f32 5.0, %v1308_v60 }
 0x3d5   : > { %1947 = vmatmul.mubr.f32.vlgmr.msra.gmra.mxu0 %v1309_v61 }
 0x495   : > { %v1376_v0 = vpop.f32.mrf.mxu0 }
 0x496   : > { %v1380_v31 = vmul.f32 %v1376_v0, %v1309_v61 }
 0x497   : > { %v1948_v33 = vpop.f32.mrf.mxu0 }
 0x498   : > { %v1381_v42 = vsel %vm1219_vm1, %v1380_v31, 0.0 }
 0x499   : > { %1382 = vadd.xlane.f32.xlu1 %v1381_v42 }
 0x522   : > { %v1383_v43 = vpop.xlane.xlu1 %1382 }
 0x523   : > { %v1384_v55 = vmax.f32 %v1383_v43, 0.0 }
 0x525   : > { %2057 = vrsqrt.f32 %v1384_v55  ;;  %vm1387_vm6 = vcmp.eq.f32.partialorder %v1384_v55, inf  ;;  %v1390_v62 = vand.u32 2147483648, %v1384_v55  ;;  %vm1389_vm7 = vcmp.eq.f32.partialorder %v1384_v55, 0.0 }
 0x532   : > { %v2058_v58 = vpop.eup %2057 }
 0x533   : > { %v1386_v59 = vmul.f32 %v2058_v58, %v1384_v55 }
 0x535   : > { %v1388_v63 = vsel %vm1387_vm6, %v1384_v55, %v1386_v59 }
 0x536   : > { %v1391_v32 = vsel %vm1389_vm7, %v1390_v62, %v1388_v63 }
 0x537   : > { %v1392_v1 = vadd.f32 1e-08, %v1391_v32 }
 0x539   : > { %2059 = vrcp.f32 %v1392_v1 }
 0x546   : > { %v2060_v2 = vpop.eup %2059 }
 0x547   : > { %v1394_v3 = vmul.f32 %v2060_v2, %v1376_v0 }
 0x549   : > { %v1395_v5 = vadd.f32 %v1394_v3, %v2901_v4 }
 0x54b   : > { %v1396_v6 = vsel %vm1219_vm1, %v1395_v5, -inf }
 0x54c   : > { %1397 = vmax.xlane.f32.xlu1 %v1396_v6 }
 0x5d5   : > { %v1398_v7 = vpop.xlane.xlu1 %1397 }
 0x5d6   : > { %v1399_v8 = vsub.f32 %v1395_v5, %v1398_v7 }
 0x5d8   : > { %v1400_v9 = vmul.f32 1.442695, %v1399_v8 }
 0x5da   : > { %2061 = vpow2.f32 %v1400_v9 }
 0x5e7   : > { %v2062_v10 = vpop.eup %2061 }
 0x5e8   : > { %v1402_v11 = vsel %vm1219_vm1, %v2062_v10, 0.0 }
 0x5e9   : > { %1403 = vadd.xlane.f32.xlu1 %v1402_v11 }
 0x672   : > { %v1404_v12 = vpop.xlane.xlu1 %1403 }
 0x673   : > { %2063 = vlog2.f32 %v1404_v12 }
 0x680   : > { %v2064_v13 = vpop.eup %2063 }
 0x681   : > { %v1406_v14 = vmul.f32 0.6931472, %v2064_v13 }
 0x683   : > { %v1407_v15 = vsub.f32 %v1399_v8, %v1406_v14 }
 0x685   : > { %v1408_v16 = vsub.f32 %v1256_v49, %v1407_v15 }
 0x687   : > { %v1409_v17 = vmul.f32 %v2054_v56, %v1408_v16 }
 0x689   : > { %v1410_v4 = vsel %vm1219_vm1, %v1409_v17, 0.0 }
 0x68a   : > { %1411 = vadd.xlane.f32.xlu1 %v1410_v4 }
 0x713   : > { %v1412_v18 = vpop.xlane.xlu1 %1411 }
 0x714   : > { %v1413_v19 = vrot.slane %v1412_v18, 4 }
 0x716   : > { %v1414_v20 = vadd.f32 %v1413_v19, %v1412_v18 }
 0x718   : > { %v1415_v21 = vrot.slane %v1414_v20, 2 }
 0x71a   : > { %v1416_v22 = vadd.f32 %v1415_v21, %v1414_v20 }
 0x71c   : > { %v1417_v23 = vrot.slane %v1416_v22, 1 }
 0x71e   : > { %v1418_v24 = vadd.f32 %v1417_v23, %v1416_v22 }
 0x720   : > { %1949 = vpush %v1418_v24 }
 0x751   : > { %s1950_s21 = spop %1949 }
 0x752   : > { %s1422_s1 = smul.f32 0.5, %s1950_s21 }
 0x754   : > { %1424 = sst [smem:[#allocation14]] %s1422_s1 }
 0x755 PF: > { %p1977_p10 = scmp.eq.s32.totalorder %s2325_s24, 1  ;;  %s2265_s15 = smov [#allocation14]  }
 0x757   : > { %1960 = dma.smem_to_hbm (%p1977_p10), %s2265_s15, 16, %s2950_s5, [#allocation8]  }
 0x758   : > { %2224 = dma.done.wait (%p1977_p10), [#allocation8], 16  }
 0x759   : > { %2226 = vsyncadd (%p1977_p10), [#allocation8], 4294967280 }
 0x75a   : > { %1440 = sfence }
 0x75b PF: > { %s25_s23 = sadd.s32 1, %s2249_s23   ;;  %s3000_s18 = smov %s2233_s19 }
 0x75c   : > { %p22_p6 = scmp.ge.s32.totalorder %s25_s23, 4   ;;  %s3001_s19 = smov %s2237_s20 }
 0x75d   : > { %s3002_s20 = smov %s2344_s29  ;;  %s3003_s21 = smov %s2245_s22 }
 0x75e   : > { %s3004_s22 = smov %s3006_s25  ;;  %24 = sbr.rel (!%p22_p6) target bundleno = 13 (0xd), region = 124 }
 0x763   :  { %1446 = vsyncpa [#allocation7], 1 }
 0x764   :  { %1448 = vsyncpa [#allocation7 + $0x1], 1 }
 0x765   :  { %1449 = vsyncpa [#allocation10], 1 }
 0x766   :  { %1451 = vsyncpa [#allocation10 + $0x1], 1 }
 0x767   :  { %1452 = vsyncpa [#allocation13], 1 }
 0x768   :  { %1454 = vsyncpa [#allocation13 + $0x1], 1 }
 0x769   :  { %1455 = vsyncpa [#allocation8], 1 }
 0x76a   :  { %1457 = vsyncpa [#allocation8 + $0x1], 1 }

</bundles_post_ra>
